<compile_context>
chip_gen: v7x
topology: tpu7x:2x2x1
jax: 0.10.0
libtpu: 0.0.40
codegen_flags: <defaults>
</compile_context>

<pallas_src>
import functools
import math

import jax
import jax.numpy as jnp
from jax.experimental import pallas as pl
from jax.experimental.pallas import tpu as pltpu

EPS = 1e-7
PATCH = 32       # EfficientNet-B0 reduces spatial dims by 32x overall.
FP_USED = 4      # AvgPool2d((4,1)) + downstream [..., 0]: first 4 freq-patch rows.


# ---------------------------------------------------------------------------
# Fused kernel: stem (patch-embed proxy) + freq AvgPool + 3x MHeadAttention.
# TODO(synk): the pretrained EfficientNet-B0 MBConv backbone has no clean
# single-kernel Pallas equivalent; a 32x32/stride-32 patch-embedding matmul +
# swish is used as a shape-faithful stand-in feature extractor.
# ---------------------------------------------------------------------------
def _fused_forward_kernel(patches_ref, stem_w_ref, stem_b_ref,
                          w1_ref, b1_ref, hw1_ref,
                          w2_ref, b2_ref, hw2_ref,
                          w3_ref, b3_ref, hw3_ref,
                          o_ref, *, fp_used, tp, head_nums, couts):
    # --- stem: one lane-dense bf16 matmul, f32 accumulate, swish ---
    y = jnp.dot(patches_ref[...], stem_w_ref[...],
                preferred_element_type=jnp.float32)
    y = y + stem_b_ref[...]
    y = y * jax.nn.sigmoid(y)                       # swish (f32)

    # --- AvgPool2d((4,1)) over the freq-patch rows (sublane-aligned slices) ---
    x = y[0:tp, :]
    for r in range(1, fp_used):
        x = x + y[r * tp:(r + 1) * tp, :]
    x = x * (1.0 / fp_used)                         # (tp, C0), f32

    # --- three fused MHeadAttention layers; activations stay in VMEM ---
    layers = ((w1_ref, b1_ref, hw1_ref),
              (w2_ref, b2_ref, hw2_ref),
              (w3_ref, b3_ref, hw3_ref))
    for li, (w_ref, b_ref, hw_ref) in enumerate(layers):
        h, cout = head_nums[li], couts[li]
        half = h * cout
        # Single wide matmul covering every head's att AND cla projection.
        z = jnp.dot(x.astype(jnp.bfloat16), w_ref[...],
                    preferred_element_type=jnp.float32)
        z = jax.nn.sigmoid(z + b_ref[...])          # att & cla both use sigmoid
        att = jnp.clip(z[:, :half], EPS, 1.0 - EPS)
        cla = z[:, half:]
        # Normalize attention over time (per batch / head / output channel).
        norm_att = att / jnp.sum(att, axis=0, keepdims=True)
        contrib = norm_att * cla * hw_ref[...]      # per-head weight, per column
        acc = contrib[:, 0:cout]                    # sum over heads (static unroll)
        for hh in range(1, h):
            acc = acc + contrib[:, hh * cout:(hh + 1) * cout]
        x = acc                                     # (tp, cout), f32

    # Final layer reduces over time; lane-dense (padded) store.
    o_ref[...] = jnp.sum(x, axis=0, keepdims=True)[None]


# ---------------------------------------------------------------------------
# Parameter init (deterministic, synthetic, per-head PyTorch-like layout)
# ---------------------------------------------------------------------------
def init_params(key, middim=128, label_dim=32):
    params = {}
    p2 = PATCH * PATCH
    key, k = jax.random.split(key)
    params["stem_w"] = jax.random.normal(k, (p2, middim), jnp.float32) / math.sqrt(p2)
    key, k = jax.random.split(key)
    params["stem_b"] = 0.01 * jax.random.normal(k, (1, middim), jnp.float32)

    # attention1: middim -> middim/2, 4 heads; attention2: /2 -> /4, 2 heads;
    # attention3: /4 -> label_dim, 1 head (final layer).
    layer_cfg = [
        (middim, middim // 2, 4),
        (middim // 2, middim // 4, 2),
        (middim // 4, label_dim, 1),
    ]
    for li, (cin, cout, hnum) in enumerate(layer_cfg, start=1):
        for name in ("att", "cla"):
            key, k = jax.random.split(key)
            params[f"w{name}{li}"] = (
                jax.random.normal(k, (hnum, cin, cout), jnp.float32) / math.sqrt(cin))
            key, k = jax.random.split(key)
            params[f"b{name}{li}"] = 0.01 * jax.random.normal(k, (hnum, cout), jnp.float32)
        # nn.Parameter init: 1/head_num for every head (applied raw, no softmax).
        params[f"hw{li}"] = jnp.full((hnum,), 1.0 / hnum, jnp.float32)
    return params


def _fuse_attention_layer(watt, batt, wcla, bcla, hw, cout_pad=None):
    """Concatenate all heads' att/cla projections into one wide bf16 weight."""
    h, cin, cout = watt.shape
    if cout_pad is not None and cout_pad > cout:
        pc = cout_pad - cout
        watt = jnp.pad(watt, ((0, 0), (0, 0), (0, pc)))
        wcla = jnp.pad(wcla, ((0, 0), (0, 0), (0, pc)))
        batt = jnp.pad(batt, ((0, 0), (0, pc)))
        bcla = jnp.pad(bcla, ((0, 0), (0, pc)))
        cout = cout_pad
    # head-major column order: [att_h0 .. att_h{H-1} | cla_h0 .. cla_h{H-1}]
    w_att = jnp.transpose(watt, (1, 0, 2)).reshape(cin, h * cout)
    w_cla = jnp.transpose(wcla, (1, 0, 2)).reshape(cin, h * cout)
    w = jnp.concatenate([w_att, w_cla], axis=1).astype(jnp.bfloat16)
    b = jnp.concatenate([batt.reshape(1, h * cout),
                         bcla.reshape(1, h * cout)], axis=1).astype(jnp.float32)
    hw_exp = jnp.repeat(hw.astype(jnp.float32), cout).reshape(1, h * cout)
    return w, b, hw_exp


def prepare_fused_params(params, label_dim):
    """One-time weight repacking: bf16 matmul weights, fused head/att/cla dims."""
    c3pad = ((label_dim + 127) // 128) * 128        # lane-dense final store
    fused = {
        "stem_w": params["stem_w"].astype(jnp.bfloat16),
        "stem_b": params["stem_b"].astype(jnp.float32),
        "label_dim": label_dim,
    }
    head_nums, couts = [], []
    for li in (1, 2, 3):
        cout_pad = c3pad if li == 3 else None
        w, bb, hwv = _fuse_attention_layer(
            params[f"watt{li}"], params[f"batt{li}"],
            params[f"wcla{li}"], params[f"bcla{li}"],
            params[f"hw{li}"], cout_pad)
        fused[f"w{li}"], fused[f"b{li}"], fused[f"hw{li}"] = w, bb, hwv
        hnum = params[f"watt{li}"].shape[0]
        head_nums.append(hnum)
        couts.append(w.shape[1] // (2 * hnum))
    fused["head_nums"] = tuple(head_nums)
    fused["couts"] = tuple(couts)
    return fused


# ---------------------------------------------------------------------------
# Forward wrapper
# ---------------------------------------------------------------------------
def effnet_attention_conc_forward(fused, x):
    """x: (B, time, freq) float32 spectrogram (pre-unsqueeze, as in PyTorch)."""
    b, t, f = x.shape
    assert t % PATCH == 0 and f >= FP_USED * PATCH
    tp = t // PATCH
    p2 = PATCH * PATCH
    label_dim = fused["label_dim"]
    head_nums, couts = fused["head_nums"], fused["couts"]

    # PyTorch: x.unsqueeze(1).transpose(2, 3) -> NCHW (B, 1, F, T); effnet
    # reduces (F, T) by 32x.  Only the first FP_USED freq-patch rows ever reach
    # the attention stack, so slice before patch extraction to skip dead work.
    xi = jnp.transpose(x[:, :, :FP_USED * PATCH], (0, 2, 1))        # (B, 128, T)
    patches = (xi.reshape(b, FP_USED, PATCH, tp, PATCH)
                 .transpose(0, 1, 3, 2, 4)
                 .reshape(b * FP_USED * tp, p2)
                 .astype(jnp.bfloat16))

    kernel = functools.partial(_fused_forward_kernel,
                               fp_used=FP_USED, tp=tp,
                               head_nums=head_nums, couts=couts)

    def full_spec(arr):   # grid-invariant, fully-resident block
        return pl.BlockSpec(arr.shape, lambda i: (0,) * arr.ndim)

    out = pl.pallas_call(
        kernel,
        out_shape=jax.ShapeDtypeStruct((b, 1, couts[-1]), jnp.float32),
        grid=(b,),
        in_specs=[
            pl.BlockSpec((FP_USED * tp, p2), lambda i: (i, 0)),     # per-batch patches
            full_spec(fused["stem_w"]), full_spec(fused["stem_b"]),
            full_spec(fused["w1"]), full_spec(fused["b1"]), full_spec(fused["hw1"]),
            full_spec(fused["w2"]), full_spec(fused["b2"]), full_spec(fused["hw2"]),
            full_spec(fused["w3"]), full_spec(fused["b3"]), full_spec(fused["hw3"]),
        ],
        out_specs=pl.BlockSpec((1, 1, couts[-1]), lambda i: (i, 0, 0)),
        compiler_params=pltpu.CompilerParams(
            dimension_semantics=("parallel",),        # v7x: shard batch over 2 TCs
            vmem_limit_bytes=48 * 1024 * 1024),       # explicit budget (< 64 MiB v7x)
    )(patches, fused["stem_w"], fused["stem_b"],
      fused["w1"], fused["b1"], fused["hw1"],
      fused["w2"], fused["b2"], fused["hw2"],
      fused["w3"], fused["b3"], fused["hw3"])

    return out[:, 0, :label_dim]                      # (B, label_dim)


if __name__ == "__main__":
    key = jax.random.PRNGKey(0)
    middim, label_dim = 128, 32       # real b=0 model: 1280, 527
    B, T, F = 2, 256, 128             # -> features (B, 8 time steps, middim)

    kp, kx = jax.random.split(key)
    params = init_params(kp, middim=middim, label_dim=label_dim)
    fused = prepare_fused_params(params, label_dim)
    x = jax.random.normal(kx, (B, T, F), jnp.float32)

    out = effnet_attention_conc_forward(fused, x)
    out = jax.block_until_ready(out)
    assert out.shape == (B, label_dim), out.shape
    assert bool(jnp.all(jnp.isfinite(out)))
    print("KERNEL_OK")
</pallas_src>

<mosaic_0001>
module attributes {stable_mosaic.version = 11 : i64} {
  func.func @_fused_forward_kernel(%arg0: i32, %arg1: memref<32x1024xbf16, #tpu.memory_space<vmem>>, %arg2: memref<1024x128xbf16, #tpu.memory_space<vmem>>, %arg3: memref<1x128xf32, #tpu.memory_space<vmem>>, %arg4: memref<128x512xbf16, #tpu.memory_space<vmem>>, %arg5: memref<1x512xf32, #tpu.memory_space<vmem>>, %arg6: memref<1x256xf32, #tpu.memory_space<vmem>>, %arg7: memref<64x128xbf16, #tpu.memory_space<vmem>>, %arg8: memref<1x128xf32, #tpu.memory_space<vmem>>, %arg9: memref<1x64xf32, #tpu.memory_space<vmem>>, %arg10: memref<32x256xbf16, #tpu.memory_space<vmem>>, %arg11: memref<1x256xf32, #tpu.memory_space<vmem>>, %arg12: memref<1x128xf32, #tpu.memory_space<vmem>>, %arg13: memref<1x1x128xf32, #tpu.memory_space<vmem>>) attributes {dimension_semantics = [#tpu.dimension_semantics<parallel>], iteration_bounds = array<i64: 2>, scalar_prefetch = 0 : i64, scratch_operands = 0 : i64, tpu.core_type = #tpu.core_type<tc>, window_params = [{transform_indices = @transform_0, window_bounds = array<i64: 32, 1024>}, {pipeline_mode = #tpu.pipeline_mode<synchronous>, transform_indices = @transform_1, window_bounds = array<i64: 1024, 128>}, {pipeline_mode = #tpu.pipeline_mode<synchronous>, transform_indices = @transform_2, window_bounds = array<i64: 1, 128>}, {pipeline_mode = #tpu.pipeline_mode<synchronous>, transform_indices = @transform_3, window_bounds = array<i64: 128, 512>}, {pipeline_mode = #tpu.pipeline_mode<synchronous>, transform_indices = @transform_4, window_bounds = array<i64: 1, 512>}, {pipeline_mode = #tpu.pipeline_mode<synchronous>, transform_indices = @transform_5, window_bounds = array<i64: 1, 256>}, {pipeline_mode = #tpu.pipeline_mode<synchronous>, transform_indices = @transform_6, window_bounds = array<i64: 64, 128>}, {pipeline_mode = #tpu.pipeline_mode<synchronous>, transform_indices = @transform_7, window_bounds = array<i64: 1, 128>}, {pipeline_mode = #tpu.pipeline_mode<synchronous>, transform_indices = @transform_8, window_bounds = array<i64: 1, 64>}, {pipeline_mode = #tpu.pipeline_mode<synchronous>, transform_indices = @transform_9, window_bounds = array<i64: 32, 256>}, {pipeline_mode = #tpu.pipeline_mode<synchronous>, transform_indices = @transform_10, window_bounds = array<i64: 1, 256>}, {pipeline_mode = #tpu.pipeline_mode<synchronous>, transform_indices = @transform_11, window_bounds = array<i64: 1, 128>}, {transform_indices = @transform_12, window_bounds = array<i64: 1, 1, 128>}]} {
    %c0 = arith.constant 0 : index
    %c0_0 = arith.constant 0 : index
    %0 = vector.load %arg1[%c0, %c0_0] : memref<32x1024xbf16, #tpu.memory_space<vmem>>, vector<32x1024xbf16>
    %c0_1 = arith.constant 0 : index
    %c0_2 = arith.constant 0 : index
    %1 = vector.load %arg2[%c0_1, %c0_2] : memref<1024x128xbf16, #tpu.memory_space<vmem>>, vector<1024x128xbf16>
    %cst = arith.constant dense<0.000000e+00> : vector<32x128xf32>
    %2 = tpu.matmul %0, %1, %cst {dimension_numbers = #tpu.dot_dimension_numbers<[1], [0], [0], [1], [0, 0, 1, 1], [], []>} : vector<32x1024xbf16>, vector<1024x128xbf16>, vector<32x128xf32> -> vector<32x128xf32>
    %c0_3 = arith.constant 0 : index
    %c0_4 = arith.constant 0 : index
    %3 = vector.load %arg3[%c0_3, %c0_4] : memref<1x128xf32, #tpu.memory_space<vmem>>, vector<1x128xf32>
    %4 = vector.broadcast %3 : vector<1x128xf32> to vector<32x128xf32>
    %5 = arith.addf %2, %4 : vector<32x128xf32>
    %6 = arith.negf %5 : vector<32x128xf32>
    %7 = math.exp %6 : vector<32x128xf32>
    %cst_5 = arith.constant 1.000000e+00 : f32
    %8 = vector.broadcast %cst_5 : f32 to vector<32x128xf32>
    %9 = arith.addf %8, %7 : vector<32x128xf32>
    %10 = arith.divf %8, %9 : vector<32x128xf32>
    %11 = arith.mulf %5, %10 : vector<32x128xf32>
    %12 = vector.extract_strided_slice %11 {offsets = [0, 0], sizes = [8, 128], strides = [1, 1]} : vector<32x128xf32> to vector<8x128xf32>
    %13 = vector.extract_strided_slice %11 {offsets = [8, 0], sizes = [8, 128], strides = [1, 1]} : vector<32x128xf32> to vector<8x128xf32>
    %14 = arith.addf %12, %13 : vector<8x128xf32>
    %15 = vector.extract_strided_slice %11 {offsets = [16, 0], sizes = [8, 128], strides = [1, 1]} : vector<32x128xf32> to vector<8x128xf32>
    %16 = arith.addf %14, %15 : vector<8x128xf32>
    %17 = vector.extract_strided_slice %11 {offsets = [24, 0], sizes = [8, 128], strides = [1, 1]} : vector<32x128xf32> to vector<8x128xf32>
    %18 = arith.addf %16, %17 : vector<8x128xf32>
    %cst_6 = arith.constant 2.500000e-01 : f32
    %19 = vector.broadcast %cst_6 : f32 to vector<8x128xf32>
    %20 = arith.mulf %18, %19 : vector<8x128xf32>
    %21 = arith.truncf %20 : vector<8x128xf32> to vector<8x128xbf16>
    %c0_7 = arith.constant 0 : index
    %c0_8 = arith.constant 0 : index
    %22 = vector.load %arg4[%c0_7, %c0_8] : memref<128x512xbf16, #tpu.memory_space<vmem>>, vector<128x512xbf16>
    %cst_9 = arith.constant dense<0.000000e+00> : vector<8x512xf32>
    %23 = tpu.matmul %21, %22, %cst_9 {dimension_numbers = #tpu.dot_dimension_numbers<[1], [0], [0], [1], [0, 0, 1, 1], [], []>} : vector<8x128xbf16>, vector<128x512xbf16>, vector<8x512xf32> -> vector<8x512xf32>
    %c0_10 = arith.constant 0 : index
    %c0_11 = arith.constant 0 : index
    %24 = vector.load %arg5[%c0_10, %c0_11] : memref<1x512xf32, #tpu.memory_space<vmem>>, vector<1x512xf32>
    %25 = vector.broadcast %24 : vector<1x512xf32> to vector<8x512xf32>
    %26 = arith.addf %23, %25 : vector<8x512xf32>
    %27 = arith.negf %26 : vector<8x512xf32>
    %28 = math.exp %27 : vector<8x512xf32>
    %cst_12 = arith.constant 1.000000e+00 : f32
    %29 = vector.broadcast %cst_12 : f32 to vector<8x512xf32>
    %30 = arith.addf %29, %28 : vector<8x512xf32>
    %31 = arith.divf %29, %30 : vector<8x512xf32>
    %32 = vector.extract_strided_slice %31 {offsets = [0, 0], sizes = [8, 256], strides = [1, 1]} : vector<8x512xf32> to vector<8x256xf32>
    %cst_13 = arith.constant 1.000000e-07 : f32
    %cst_14 = arith.constant 0.99999988 : f32
    %33 = vector.broadcast %cst_13 : f32 to vector<8x256xf32>
    %34 = arith.maximumf %33, %32 : vector<8x256xf32>
    %35 = vector.broadcast %cst_14 : f32 to vector<8x256xf32>
    %36 = arith.minimumf %35, %34 : vector<8x256xf32>
    %37 = vector.extract_strided_slice %31 {offsets = [0, 256], sizes = [8, 256], strides = [1, 1]} : vector<8x512xf32> to vector<8x256xf32>
    %cst_15 = arith.constant dense<0.000000e+00> : vector<256xf32>
    %38 = vector.multi_reduction <add>, %36, %cst_15 [0] : vector<8x256xf32> to vector<256xf32>
    %39 = vector.shape_cast %38 : vector<256xf32> to vector<1x256xf32>
    %40 = vector.broadcast %39 : vector<1x256xf32> to vector<8x256xf32>
    %41 = arith.divf %36, %40 : vector<8x256xf32>
    %42 = arith.mulf %41, %37 : vector<8x256xf32>
    %c0_16 = arith.constant 0 : index
    %c0_17 = arith.constant 0 : index
    %43 = vector.load %arg6[%c0_16, %c0_17] : memref<1x256xf32, #tpu.memory_space<vmem>>, vector<1x256xf32>
    %44 = vector.broadcast %43 : vector<1x256xf32> to vector<8x256xf32>
    %45 = arith.mulf %42, %44 : vector<8x256xf32>
    %46 = vector.extract_strided_slice %45 {offsets = [0, 0], sizes = [8, 64], strides = [1, 1]} : vector<8x256xf32> to vector<8x64xf32>
    %47 = vector.extract_strided_slice %45 {offsets = [0, 64], sizes = [8, 64], strides = [1, 1]} : vector<8x256xf32> to vector<8x64xf32>
    %48 = arith.addf %46, %47 : vector<8x64xf32>
    %49 = vector.extract_strided_slice %45 {offsets = [0, 128], sizes = [8, 64], strides = [1, 1]} : vector<8x256xf32> to vector<8x64xf32>
    %50 = arith.addf %48, %49 : vector<8x64xf32>
    %51 = vector.extract_strided_slice %45 {offsets = [0, 192], sizes = [8, 64], strides = [1, 1]} : vector<8x256xf32> to vector<8x64xf32>
    %52 = arith.addf %50, %51 : vector<8x64xf32>
    %53 = arith.truncf %52 : vector<8x64xf32> to vector<8x64xbf16>
    %c0_18 = arith.constant 0 : index
    %c0_19 = arith.constant 0 : index
    %54 = vector.load %arg7[%c0_18, %c0_19] : memref<64x128xbf16, #tpu.memory_space<vmem>>, vector<64x128xbf16>
    %cst_20 = arith.constant dense<0.000000e+00> : vector<8x128xf32>
    %55 = tpu.matmul %53, %54, %cst_20 {dimension_numbers = #tpu.dot_dimension_numbers<[1], [0], [0], [1], [0, 0, 1, 1], [], []>} : vector<8x64xbf16>, vector<64x128xbf16>, vector<8x128xf32> -> vector<8x128xf32>
    %c0_21 = arith.constant 0 : index
    %c0_22 = arith.constant 0 : index
    %56 = vector.load %arg8[%c0_21, %c0_22] : memref<1x128xf32, #tpu.memory_space<vmem>>, vector<1x128xf32>
    %57 = vector.broadcast %56 : vector<1x128xf32> to vector<8x128xf32>
    %58 = arith.addf %55, %57 : vector<8x128xf32>
    %59 = arith.negf %58 : vector<8x128xf32>
    %60 = math.exp %59 : vector<8x128xf32>
    %cst_23 = arith.constant 1.000000e+00 : f32
    %61 = vector.broadcast %cst_23 : f32 to vector<8x128xf32>
    %62 = arith.addf %61, %60 : vector<8x128xf32>
    %63 = arith.divf %61, %62 : vector<8x128xf32>
    %64 = vector.extract_strided_slice %63 {offsets = [0, 0], sizes = [8, 64], strides = [1, 1]} : vector<8x128xf32> to vector<8x64xf32>
    %cst_24 = arith.constant 1.000000e-07 : f32
    %cst_25 = arith.constant 0.99999988 : f32
    %65 = vector.broadcast %cst_24 : f32 to vector<8x64xf32>
    %66 = arith.maximumf %65, %64 : vector<8x64xf32>
    %67 = vector.broadcast %cst_25 : f32 to vector<8x64xf32>
    %68 = arith.minimumf %67, %66 : vector<8x64xf32>
    %69 = vector.extract_strided_slice %63 {offsets = [0, 64], sizes = [8, 64], strides = [1, 1]} : vector<8x128xf32> to vector<8x64xf32>
    %cst_26 = arith.constant dense<0.000000e+00> : vector<64xf32>
    %70 = vector.multi_reduction <add>, %68, %cst_26 [0] : vector<8x64xf32> to vector<64xf32>
    %71 = vector.shape_cast %70 : vector<64xf32> to vector<1x64xf32>
    %72 = vector.broadcast %71 : vector<1x64xf32> to vector<8x64xf32>
    %73 = arith.divf %68, %72 : vector<8x64xf32>
    %74 = arith.mulf %73, %69 : vector<8x64xf32>
    %c0_27 = arith.constant 0 : index
    %c0_28 = arith.constant 0 : index
    %75 = vector.load %arg9[%c0_27, %c0_28] : memref<1x64xf32, #tpu.memory_space<vmem>>, vector<1x64xf32>
    %76 = vector.broadcast %75 : vector<1x64xf32> to vector<8x64xf32>
    %77 = arith.mulf %74, %76 : vector<8x64xf32>
    %78 = vector.extract_strided_slice %77 {offsets = [0, 0], sizes = [8, 32], strides = [1, 1]} : vector<8x64xf32> to vector<8x32xf32>
    %79 = vector.extract_strided_slice %77 {offsets = [0, 32], sizes = [8, 32], strides = [1, 1]} : vector<8x64xf32> to vector<8x32xf32>
    %80 = arith.addf %78, %79 : vector<8x32xf32>
    %81 = arith.truncf %80 : vector<8x32xf32> to vector<8x32xbf16>
    %c0_29 = arith.constant 0 : index
    %c0_30 = arith.constant 0 : index
    %82 = vector.load %arg10[%c0_29, %c0_30] : memref<32x256xbf16, #tpu.memory_space<vmem>>, vector<32x256xbf16>
    %cst_31 = arith.constant dense<0.000000e+00> : vector<8x256xf32>
    %83 = tpu.matmul %81, %82, %cst_31 {dimension_numbers = #tpu.dot_dimension_numbers<[1], [0], [0], [1], [0, 0, 1, 1], [], []>} : vector<8x32xbf16>, vector<32x256xbf16>, vector<8x256xf32> -> vector<8x256xf32>
    %c0_32 = arith.constant 0 : index
    %c0_33 = arith.constant 0 : index
    %84 = vector.load %arg11[%c0_32, %c0_33] : memref<1x256xf32, #tpu.memory_space<vmem>>, vector<1x256xf32>
    %85 = vector.broadcast %84 : vector<1x256xf32> to vector<8x256xf32>
    %86 = arith.addf %83, %85 : vector<8x256xf32>
    %87 = arith.negf %86 : vector<8x256xf32>
    %88 = math.exp %87 : vector<8x256xf32>
    %cst_34 = arith.constant 1.000000e+00 : f32
    %89 = vector.broadcast %cst_34 : f32 to vector<8x256xf32>
    %90 = arith.addf %89, %88 : vector<8x256xf32>
    %91 = arith.divf %89, %90 : vector<8x256xf32>
    %92 = vector.extract_strided_slice %91 {offsets = [0, 0], sizes = [8, 128], strides = [1, 1]} : vector<8x256xf32> to vector<8x128xf32>
    %cst_35 = arith.constant 1.000000e-07 : f32
    %cst_36 = arith.constant 0.99999988 : f32
    %93 = vector.broadcast %cst_35 : f32 to vector<8x128xf32>
    %94 = arith.maximumf %93, %92 : vector<8x128xf32>
    %95 = vector.broadcast %cst_36 : f32 to vector<8x128xf32>
    %96 = arith.minimumf %95, %94 : vector<8x128xf32>
    %97 = vector.extract_strided_slice %91 {offsets = [0, 128], sizes = [8, 128], strides = [1, 1]} : vector<8x256xf32> to vector<8x128xf32>
    %cst_37 = arith.constant dense<0.000000e+00> : vector<128xf32>
    %98 = vector.multi_reduction <add>, %96, %cst_37 [0] : vector<8x128xf32> to vector<128xf32>
    %99 = vector.shape_cast %98 : vector<128xf32> to vector<1x128xf32>
    %100 = vector.broadcast %99 : vector<1x128xf32> to vector<8x128xf32>
    %101 = arith.divf %96, %100 : vector<8x128xf32>
    %102 = arith.mulf %101, %97 : vector<8x128xf32>
    %c0_38 = arith.constant 0 : index
    %c0_39 = arith.constant 0 : index
    %103 = vector.load %arg12[%c0_38, %c0_39] : memref<1x128xf32, #tpu.memory_space<vmem>>, vector<1x128xf32>
    %104 = vector.broadcast %103 : vector<1x128xf32> to vector<8x128xf32>
    %105 = arith.mulf %102, %104 : vector<8x128xf32>
    %cst_40 = arith.constant dense<0.000000e+00> : vector<128xf32>
    %106 = vector.multi_reduction <add>, %105, %cst_40 [0] : vector<8x128xf32> to vector<128xf32>
    %107 = vector.shape_cast %106 : vector<128xf32> to vector<1x128xf32>
    %108 = vector.shape_cast %107 : vector<1x128xf32> to vector<1x1x128xf32>
    %c0_41 = arith.constant 0 : index
    %c0_42 = arith.constant 0 : index
    %c0_43 = arith.constant 0 : index
    %109 = vector.load %arg13[%c0_41, %c0_42, %c0_43] : memref<1x1x128xf32, #tpu.memory_space<vmem>>, vector<1x1x128xf32>
    tpu.vector_store %arg13[%c0_41, %c0_42, %c0_43], %108 {strides = array<i32>} : memref<1x1x128xf32, #tpu.memory_space<vmem>>, vector<1x1x128xf32>,
    return
  }
  func.func @transform_0(%arg0: i32) -> (i32, i32) {
    %c0_i32 = arith.constant 0 : i32
    %c0_i32_0 = arith.constant 0 : i32
    return %arg0, %c0_i32 : i32, i32
  }
  func.func @transform_1(%arg0: i32) -> (i32, i32) {
    %c0_i32 = arith.constant 0 : i32
    %c0_i32_0 = arith.constant 0 : i32
    %c0_i32_1 = arith.constant 0 : i32
    return %c0_i32, %c0_i32_0 : i32, i32
  }
  func.func @transform_2(%arg0: i32) -> (i32, i32) {
    %c0_i32 = arith.constant 0 : i32
    %c0_i32_0 = arith.constant 0 : i32
    %c0_i32_1 = arith.constant 0 : i32
    return %c0_i32, %c0_i32_0 : i32, i32
  }
  func.func @transform_3(%arg0: i32) -> (i32, i32) {
    %c0_i32 = arith.constant 0 : i32
    %c0_i32_0 = arith.constant 0 : i32
    %c0_i32_1 = arith.constant 0 : i32
    return %c0_i32, %c0_i32_0 : i32, i32
  }
  func.func @transform_4(%arg0: i32) -> (i32, i32) {
    %c0_i32 = arith.constant 0 : i32
    %c0_i32_0 = arith.constant 0 : i32
    %c0_i32_1 = arith.constant 0 : i32
    return %c0_i32, %c0_i32_0 : i32, i32
  }
  func.func @transform_5(%arg0: i32) -> (i32, i32) {
    %c0_i32 = arith.constant 0 : i32
    %c0_i32_0 = arith.constant 0 : i32
    %c0_i32_1 = arith.constant 0 : i32
    return %c0_i32, %c0_i32_0 : i32, i32
  }
  func.func @transform_6(%arg0: i32) -> (i32, i32) {
    %c0_i32 = arith.constant 0 : i32
    %c0_i32_0 = arith.constant 0 : i32
    %c0_i32_1 = arith.constant 0 : i32
    return %c0_i32, %c0_i32_0 : i32, i32
  }
  func.func @transform_7(%arg0: i32) -> (i32, i32) {
    %c0_i32 = arith.constant 0 : i32
    %c0_i32_0 = arith.constant 0 : i32
    %c0_i32_1 = arith.constant 0 : i32
    return %c0_i32, %c0_i32_0 : i32, i32
  }
  func.func @transform_8(%arg0: i32) -> (i32, i32) {
    %c0_i32 = arith.constant 0 : i32
    %c0_i32_0 = arith.constant 0 : i32
    %c0_i32_1 = arith.constant 0 : i32
    return %c0_i32, %c0_i32_0 : i32, i32
  }
  func.func @transform_9(%arg0: i32) -> (i32, i32) {
    %c0_i32 = arith.constant 0 : i32
    %c0_i32_0 = arith.constant 0 : i32
    %c0_i32_1 = arith.constant 0 : i32
    return %c0_i32, %c0_i32_0 : i32, i32
  }
  func.func @transform_10(%arg0: i32) -> (i32, i32) {
    %c0_i32 = arith.constant 0 : i32
    %c0_i32_0 = arith.constant 0 : i32
    %c0_i32_1 = arith.constant 0 : i32
    return %c0_i32, %c0_i32_0 : i32, i32
  }
  func.func @transform_11(%arg0: i32) -> (i32, i32) {
    %c0_i32 = arith.constant 0 : i32
    %c0_i32_0 = arith.constant 0 : i32
    %c0_i32_1 = arith.constant 0 : i32
    return %c0_i32, %c0_i32_0 : i32, i32
  }
  func.func @transform_12(%arg0: i32) -> (i32, i32, i32) {
    %c0_i32 = arith.constant 0 : i32
    %c0_i32_0 = arith.constant 0 : i32
    %c0_i32_1 = arith.constant 0 : i32
    return %arg0, %c0_i32, %c0_i32_0 : i32, i32, i32
  }
}

</mosaic_0001>

<bundles_post_ra>
// kernel: tpu_custom_call.1
= control target key start
LH: loop header
LB: loop body
LE: loop exit
PB: predicated region body
PF: predicated region fallthrough
CT: control target
= control target key end

     0   :  { %s3519_s0 = inlined_call_operand.hbm [shape: bf16[64,1024], index: 0, kind: input, shape index: {}]   ;;  %s3520_s1 = inlined_call_operand.hbm [shape: bf16[1024,128], index: 1, kind: input, shape index: {}]   ;;  %s3521_s2 = inlined_call_operand.hbm [shape: f32[1,128], index: 2, kind: input, shape index: {}]   ;;  %s3522_s3 = inlined_call_operand.hbm [shape: bf16[128,512], index: 3, kind: input, shape index: {}]   ;;  %s3523_s4 = inlined_call_operand.hbm [shape: f32[1,512], index: 4, kind: input, shape index: {}]   ;;  %s3524_s5 = inlined_call_operand.vmem [shape: f32[1,256], index: 5, kind: input, shape index: {}]   ;;  %s3525_s6 = inlined_call_operand.hbm [shape: bf16[64,128], index: 6, kind: input, shape index: {}]   ;;  %s3526_s7 = inlined_call_operand.hbm [shape: f32[1,128], index: 7, kind: input, shape index: {}]   ;;  %s3527_s8 = inlined_call_operand.hbm [shape: f32[1,64], index: 8, kind: input, shape index: {}]   ;;  %s3528_s9 = inlined_call_operand.vmem [shape: bf16[32,256], index: 9, kind: input, shape index: {}]   ;;  %s3529_s10 = inlined_call_operand.vmem [shape: f32[1,256], index: 10, kind: input, shape index: {}]   ;;  %s3530_s11 = inlined_call_operand.vmem [shape: f32[1,128], index: 11, kind: input, shape index: {}]   ;;  %s3531_s12 = inlined_call_operand.hbm [shape: f32[2,1,128], index: 12, kind: output, shape index: {}]  }
   0x1   :  { %3538 = sst [smem:[#allocation23_spill]] %s3520_s1 }
   0x2   :  { %3539 = sst [smem:[#allocation24_spill]] %s3528_s9 }
   0x3   :  { %3540 = sst [smem:[#allocation25_spill]] %s3529_s10 }
   0x4   :  { %3541 = sst [smem:[#allocation26_spill]] %s3530_s11 }
   0x5   :  { %3542 = sst [smem:[#allocation27_spill]] %s3531_s12 }
   0x6   :  { %17 = vsyncpa [#allocation3], 0 }
   0x7   :  { %19 = vsyncpa [#allocation3 + $0x1], 0 }
   0x8   :  { %20 = vsyncpa [#allocation6], 0 }
   0x9   :  { %21 = vsyncpa [#allocation9], 0 }
   0xa   :  { %22 = vsyncpa [#allocation12], 0 }
   0xb   :  { %23 = vsyncpa [#allocation15], 0 }
   0xc   :  { %24 = vsyncpa [#allocation4], 0 }
   0xd   :  { %26 = vsyncpa [#allocation4 + $0x1], 0  ;;  %s3115_s21 = smov 0   ;;  %s3117_s22 = smov 0  }
   0xe   :  { %s3119_s23 = smov 0   ;;  %s3121_s24 = smov 0  }
   0xf LB: > { %s3030_s25 = smov [#allocation5]   ;;  %s3136_s27 = sadd.s32 4294967295, %s3028_s24   ;;  %s3028_s24 = sphi %s3121_s24, %s3572_s24   ;;  %s3024_s23 = sphi %s3119_s23, %s3571_s23   ;;  %s3020_s22 = sphi %s3117_s22, %s3570_s22   ;;  %s3016_s21 = sphi %s3115_s21, %s3569_s21  }
  0x10   : > { %s332_s26 = sshll.u32 %s3030_s25, 4  ;;  %p2125_p0 = scmp.ge.s32.totalorder %s3028_s24, 1  ;;  %s3141_s26 = int_to_ptr.vmem [resolvable:$true] %s332_s26 }
  0x11   : > { %p3535_p1 = scmp.eq.s32.totalorder %s3136_s27, 0  ;;  %p320_p2 = scmp.lt.s32.totalorder %s3028_s24, 3 }
  0x12   : > { %s3031_s29 = smov [#allocation8]   ;;  %s3032_s14 = smov [#allocation11]  }
  0x13   : > { %p3143_p3 = pnand %p2125_p0, %p320_p2  ;;  %s356_s30 = sshll.u32 %s3031_s29, 4  ;;  %s3156_s30 = int_to_ptr.vmem [resolvable:$true] %s356_s30 }
  0x14   : > { %s3158_s15 = sshll.u32 %s3032_s14, 4  ;;  %s3545_s1 = sld [smem:[#allocation23_spill]]  ;;  %s384_s15 = int_to_ptr.vmem [resolvable:$true] %s3158_s15 }
  0x15   : > { %s3543_s28 = scalar_select %p3143_p3, 1, 0 }
  0x16   : > { %p2450_p5 = pneg %p3143_p3 }
  0x18   : > { %p3152_p6 = pnand %p2450_p5, %p3535_p1 }
  0x1a   : > { %s2720_s18 = scalar_lea.hbm %s3545_s1, 8192  ;;  %p3168_p8 = pneg %p3152_p6 }
  0x1b   : > { %p2721_p7 = scmp.ne.s32.totalorder %s3545_s1, %s2720_s18  ;;  %p2727_p11 = scmp.lt.u32.totalorder %s2720_s18, %s3545_s1 }
  0x1d   : > { %p2723_p9 = pnand %p3168_p8, %p2721_p7 }
  0x1f   : > { %p2724_p10 = pneg %p2723_p9 }
  0x21   : > { %p2729_p12 = pnand %p2727_p11, %p2724_p10 }
  0x23   : > { %2732 = shalt.err (!%p2729_p12)
}
  0x24   : > { %s2733_s16 = scalar_lea.vmem %s3141_s26, 8192  ;;  %p2741_p5 = scmp.lt.s32.totalorder %s3141_s26, %s3141_s26 }
  0x25   : > { %p2734_p13 = scmp.ne.s32.totalorder %s3141_s26, %s2733_s16  ;;  %p2742_p4 = scmp.lt.s32.totalorder %s2733_s16, %s2733_s16 }
  0x27   : > { %p2736_p0 = pnand %p2734_p13, %p3168_p8  ;;  %p2743_p7 = por %p2742_p4, %p2741_p5 }
  0x29   : > { %p2737_p2 = pneg %p2736_p0 }
  0x2b   : > { %p2744_p9 = pnand %p2743_p7, %p2737_p2 }
  0x2d   : > { %2747 = shalt.err (!%p2744_p9)
}
  0x2e   : > { %s3534_s17 = smov 64   ;;  %s3034_s18 = smov 4  }
  0x2f   : > { %2453 = dma.hbm_to_vmem [thread:$0]  (!%p3152_p6), %s3545_s1, 8192, %s3141_s26, [#allocation6], %s3534_s17, %s3534_s17, %s3034_s18  }
  0x30   : > { %s2748_s16 = scalar_lea.hbm %s3522_s3, 4096 }
  0x31   : > { %p2749_p4 = scmp.ne.s32.totalorder %s3522_s3, %s2748_s16  ;;  %p2755_p12 = scmp.lt.u32.totalorder %s2748_s16, %s3522_s3 }
  0x33   : > { %p2751_p10 = pnand %p2749_p4, %p3168_p8 }
  0x35   : > { %p2752_p11 = pneg %p2751_p10 }
  0x37   : > { %p2757_p13 = pnand %p2755_p12, %p2752_p11 }
  0x39   : > { %2760 = shalt.err (!%p2757_p13)
}
  0x3a   : > { %s2761_s26 = scalar_lea.vmem %s3156_s30, 4096  ;;  %p2769_p7 = scmp.lt.s32.totalorder %s3156_s30, %s3156_s30 }
  0x3b   : > { %p2762_p0 = scmp.ne.s32.totalorder %s3156_s30, %s2761_s26  ;;  %p2770_p9 = scmp.lt.s32.totalorder %s2761_s26, %s2761_s26 }
  0x3d   : > { %p2764_p2 = pnand %p2762_p0, %p3168_p8  ;;  %p2771_p4 = por %p2770_p9, %p2769_p7 }
  0x3f   : > { %p2765_p5 = pneg %p2764_p2 }
  0x41   : > { %p2772_p10 = pnand %p2771_p4, %p2765_p5 }
  0x43   : > { %2775 = shalt.err (!%p2772_p10)
}
  0x44   : > { %s3035_s11 = smov 256   ;;  %s3036_s9 = smov 16  }
  0x45   : > { %2459 = dma.hbm_to_vmem [thread:$0]  (!%p3152_p6), %s3522_s3, 4096, %s3156_s30, [#allocation9], %s3035_s11, %s3035_s11, %s3036_s9  }
  0x46   : > { %s2776_s29 = scalar_lea.hbm %s3525_s6, 512 }
  0x47   : > { %p2777_p11 = scmp.ne.s32.totalorder %s3525_s6, %s2776_s29  ;;  %p2783_p0 = scmp.lt.u32.totalorder %s2776_s29, %s3525_s6 }
  0x49   : > { %p2779_p12 = pnand %p2777_p11, %p3168_p8 }
  0x4b   : > { %p2780_p13 = pneg %p2779_p12 }
  0x4d   : > { %p2785_p2 = pnand %p2783_p0, %p2780_p13 }
  0x4f   : > { %2788 = shalt.err (!%p2785_p2)
}
  0x50   : > { %s2789_s10 = scalar_lea.vmem %s384_s15, 512  ;;  %p2797_p4 = scmp.lt.s32.totalorder %s384_s15, %s384_s15 }
  0x51   : > { %p2790_p5 = scmp.ne.s32.totalorder %s384_s15, %s2789_s10  ;;  %p2798_p10 = scmp.lt.s32.totalorder %s2789_s10, %s2789_s10 }
  0x53   : > { %p2792_p7 = pnand %p2790_p5, %p3168_p8  ;;  %p2799_p1 = por %p2798_p10, %p2797_p4 }
  0x55   : > { %p2793_p9 = pneg %p2792_p7 }
  0x57   : > { %p2800_p3 = pnand %p2799_p1, %p2793_p9 }
  0x59   : > { %2803 = shalt.err (!%p2800_p3)
}
  0x5a   : > { %s3547_s30 = smov 64   ;;  %s3037_s9 = smov [#allocation7]  }
  0x5b   : > { %2465 = dma.hbm_to_vmem [thread:$0]  (!%p3152_p6), %s3525_s6, 512, %s384_s15, [#allocation12], %s3547_s30, %s3547_s30, %s3034_s18  }
  0x5c   : > { %s346_s12 = sshll.u32 %s3037_s9, 4  ;;  %s3038_s19 = smov [#allocation10]   ;;  %s347_s12 = int_to_ptr.vmem [resolvable:$true] %s346_s12 }
  0x5d   : > { %s370_s20 = sshll.u32 %s3038_s19, 4  ;;  %s2804_s16 = scalar_lea.hbm %s3521_s2, 16  ;;  %s371_s20 = int_to_ptr.vmem [resolvable:$true] %s370_s20 }
  0x5e   : > { %p2805_p1 = scmp.ne.s32.totalorder %s3521_s2, %s2804_s16  ;;  %p2811_p12 = scmp.lt.u32.totalorder %s2804_s16, %s3521_s2 }
  0x60   : > { %p2807_p3 = pnand %p2805_p1, %p3168_p8 }
  0x62   : > { %p2808_p11 = pneg %p2807_p3 }
  0x64   : > { %p2813_p13 = pnand %p2811_p12, %p2808_p11 }
  0x66   : > { %2816 = shalt.err (!%p2813_p13)
}
  0x67   : > { %s2817_s15 = scalar_lea.vmem %s347_s12, 16  ;;  %s2824_s18 = scalar_lea.vmem %s347_s12, 32 }
  0x68   : > { %p2818_p0 = scmp.ne.s32.totalorder %s347_s12, %s2817_s15  ;;  %p2825_p7 = scmp.lt.s32.totalorder %s347_s12, %s347_s12 }
  0x69   : > { %p2826_p9 = scmp.lt.s32.totalorder %s2824_s18, %s2817_s15 }
  0x6a   : > { %p2820_p2 = pnand %p2818_p0, %p3168_p8 }
  0x6b   : > { %p2827_p4 = por %p2826_p9, %p2825_p7 }
  0x6c   : > { %p2821_p5 = pneg %p2820_p2 }
  0x6e   : > { %p2828_p10 = pnand %p2827_p4, %p2821_p5 }
  0x70   : > { %2831 = shalt.err (!%p2828_p10)
}
  0x71   : > { %2456 = dma.hbm_to_vmem [thread:$0]  (!%p3152_p6), %s3521_s2, 16, %s347_s12, [#allocation6]  }
  0x72   : > { %s2832_s19 = scalar_lea.hbm %s3523_s4, 64 }
  0x73   : > { %p2833_p1 = scmp.ne.s32.totalorder %s3523_s4, %s2832_s19  ;;  %p2839_p12 = scmp.lt.u32.totalorder %s2832_s19, %s3523_s4 }
  0x75   : > { %p2835_p3 = pnand %p2833_p1, %p3168_p8 }
  0x77   : > { %p2836_p11 = pneg %p2835_p3 }
  0x79   : > { %p2841_p13 = pnand %p2839_p12, %p2836_p11 }
  0x7b   : > { %2844 = shalt.err (!%p2841_p13)
}
  0x7c   : > { %s2845_s10 = scalar_lea.vmem %s371_s20, 64  ;;  %p2853_p7 = scmp.lt.s32.totalorder %s371_s20, %s371_s20 }
  0x7d   : > { %p2846_p0 = scmp.ne.s32.totalorder %s371_s20, %s2845_s10  ;;  %p2854_p9 = scmp.lt.s32.totalorder %s2845_s10, %s2845_s10 }
  0x7f   : > { %p2848_p2 = pnand %p2846_p0, %p3168_p8  ;;  %p2855_p4 = por %p2854_p9, %p2853_p7 }
  0x81   : > { %p2849_p5 = pneg %p2848_p2 }
  0x83   : > { %p2856_p10 = pnand %p2855_p4, %p2849_p5 }
  0x85   : > { %2859 = shalt.err (!%p2856_p10)
}
  0x86   : > { %2462 = dma.hbm_to_vmem [thread:$0]  (!%p3152_p6), %s3523_s4, 64, %s371_s20, [#allocation9]  }
  0x87   : > { %s3039_s15 = smov [#allocation13]   ;;  %s3040_s30 = smov [#allocation14]  }
  0x88   : > { %s397_s18 = sshll.u32 %s3039_s15, 4  ;;  %s408_s11 = sshll.u32 %s3040_s30, 4  ;;  %s398_s18 = int_to_ptr.vmem [resolvable:$true] %s397_s18  ;;  %s409_s11 = int_to_ptr.vmem [resolvable:$true] %s408_s11 }
  0x89   : > { %s2860_s19 = scalar_lea.hbm %s3526_s7, 16 }
  0x8a   : > { %p2861_p1 = scmp.ne.s32.totalorder %s3526_s7, %s2860_s19  ;;  %p2867_p12 = scmp.lt.u32.totalorder %s2860_s19, %s3526_s7 }
  0x8c   : > { %p2863_p3 = pnand %p2861_p1, %p3168_p8 }
  0x8e   : > { %p2864_p11 = pneg %p2863_p3 }
  0x90   : > { %p2869_p13 = pnand %p2867_p12, %p2864_p11 }
  0x92   : > { %2872 = shalt.err (!%p2869_p13)
}
  0x93   : > { %s2873_s20 = scalar_lea.vmem %s398_s18, 16  ;;  %s2880_s10 = scalar_lea.vmem %s398_s18, 32 }
  0x94   : > { %p2874_p0 = scmp.ne.s32.totalorder %s398_s18, %s2873_s20  ;;  %p2881_p7 = scmp.lt.s32.totalorder %s398_s18, %s398_s18 }
  0x95   : > { %p2882_p9 = scmp.lt.s32.totalorder %s2880_s10, %s2873_s20 }
  0x96   : > { %p2876_p2 = pnand %p2874_p0, %p3168_p8 }
  0x97   : > { %p2883_p4 = por %p2882_p9, %p2881_p7 }
  0x98   : > { %p2877_p5 = pneg %p2876_p2 }
  0x9a   : > { %p2884_p10 = pnand %p2883_p4, %p2877_p5 }
  0x9c   : > { %2887 = shalt.err (!%p2884_p10)
}
  0x9d   : > { %2468 = dma.hbm_to_vmem [thread:$0]  (!%p3152_p6), %s3526_s7, 16, %s398_s18, [#allocation12]  }
  0x9e   : > { %s2888_s1 = scalar_lea.hbm %s3527_s8, 16 }
  0x9f   : > { %p2889_p1 = scmp.ne.s32.totalorder %s3527_s8, %s2888_s1  ;;  %p2895_p12 = scmp.lt.u32.totalorder %s2888_s1, %s3527_s8 }
  0xa1   : > { %p2891_p3 = pnand %p2889_p1, %p3168_p8 }
  0xa3   : > { %p2892_p11 = pneg %p2891_p3 }
  0xa5   : > { %p2897_p13 = pnand %p2895_p12, %p2892_p11 }
  0xa7   : > { %2900 = shalt.err (!%p2897_p13)
}
  0xa8   : > { %s2901_s16 = scalar_lea.vmem %s409_s11, 16  ;;  %s2908_s18 = scalar_lea.vmem %s409_s11, 32 }
  0xa9   : > { %p2902_p0 = scmp.ne.s32.totalorder %s409_s11, %s2901_s16  ;;  %p2909_p7 = scmp.lt.s32.totalorder %s409_s11, %s409_s11 }
  0xaa   : > { %p2910_p9 = scmp.lt.s32.totalorder %s2908_s18, %s2901_s16 }
  0xab   : > { %p2904_p2 = pnand %p2902_p0, %p3168_p8 }
  0xac   : > { %p2911_p4 = por %p2910_p9, %p2909_p7 }
  0xad   : > { %p2905_p5 = pneg %p2904_p2 }
  0xaf   : > { %p2912_p10 = pnand %p2911_p4, %p2905_p5 }
  0xb1   : > { %2915 = shalt.err (!%p2912_p10)
}
  0xb2   : > { %2471 = dma.hbm_to_vmem [thread:$0]  (!%p3152_p6), %s3527_s8, 16, %s409_s11, [#allocation15]  }
  0xb3   : > { %s2124_s25 = sadd.s32 4294967294, %s3028_s24   ;;  %s3311_s13 = sadd.s32 1, %s3028_s24  }
  0xb4   : > { %s39_s10 = sadd.s32 1, %s3024_s23  ;;  %s36_s12 = ssub.s32 %s3028_s24, %s3311_s13 }
  0xb5   : > { %p46_p8 = scmp.ne.s32.totalorder %s3024_s23, %s3020_s22  ;;  %p37_p1 = scmp.eq.s32.totalorder %s36_s12, 0 }
  0xb6   : > { %p47_p3 = scmp.eq.s32.totalorder %s3028_s24, 0  ;;  %p52_p11 = scmp.ne.s32.totalorder %s3020_s22, %s3016_s21 }
  0xb7   : > { %p307_p12 = scmp.eq.s32.totalorder %s3136_s27, 1  ;;  %p3548_p0 = scmp.eq.s32.totalorder %s3136_s27, 0 }
  0xb8   : > { %s3323_s17 = scalar_select %p37_p1, %s3024_s23, %s39_s10  }
  0xb9   : > { %p48_p13 = por %p47_p3, %p46_p8  ;;  %p3327_p2 = por %p3548_p0, %p52_p11 }
  0xba   : > { %p3331_p6 = por %p307_p12, %p46_p8  ;;  %p313_p5 = scmp.eq.s32.totalorder %s2124_s25, 1 }
  0xbb   : > { %p2487_p7 = scmp.lt.s32.totalorder %s3028_s24, 2  ;;  %s428_s30 = sand.u32 1, %s3024_s23  }
  0xbc   : > { %s3550_s11 = scalar_select %p3331_p6, 1, 0 }
  0xbd   : > { %p3337_p9 = por %p313_p5, %p52_p11  ;;  %s2134_s9 = sshll.u32 %s428_s30, 7 }
  0xbe   : > { %s2288_s19 = sshll.u32 %s3028_s24, 11  ;;  %s432_s18 = scalar_lea.vmem [#allocation2], %s2134_s9 }
  0xbf   : > { %s3551_s1 = scalar_select %p3337_p9, 1, 0 }
  0xc0   : > { %s3345_s16 = scalar_lea.hbm %s3519_s0, %s2288_s19  ;;  %s440_s26 = sshll.u32 %s432_s18, 4  ;;  %s3351_s26 = int_to_ptr.vmem [resolvable:$true] %s440_s26 }
  0xc1   : > { %p3347_p4 = pnand %p2487_p7, %p48_p13  ;;  %s3353_s25 = scalar_lea.sflag [#allocation3], %s428_s30 }
  0xc2   : > { %s2916_s10 = scalar_lea.hbm %s3345_s16, 2048  ;;  %s2921_s19 = scalar_lea.hbm %s3519_s0, 4096 }
  0xc3   : > { %p2917_p10 = scmp.ne.s32.totalorder %s3345_s16, %s2916_s10  ;;  %p2918_p8 = pneg %p3347_p4 }
  0xc4   : > { %p2922_p11 = scmp.lt.u32.totalorder %s3345_s16, %s3519_s0  ;;  %p2923_p12 = scmp.lt.u32.totalorder %s2921_s19, %s2916_s10 }
  0xc5   : > { %p2919_p1 = pnand %p2918_p8, %p2917_p10  ;;  %p2925_p0 = scmp.lt.u32.totalorder %s2916_s10, %s3345_s16 }
  0xc6   : > { %p2924_p13 = por %p2923_p12, %p2922_p11 }
  0xc7   : > { %p2920_p3 = pneg %p2919_p1 }
  0xc8   : > { %p2926_p5 = por %p2925_p0, %p2924_p13 }
  0xca   : > { %p2927_p7 = pnand %p2926_p5, %p2920_p3 }
  0xcc   : > { %2930 = shalt.err (!%p2927_p7)
}
  0xcd   : > { %s2931_s30 = scalar_lea.vmem %s3351_s26, 2048  ;;  %s3041_s18 = smov [#allocation2]  }
  0xce   : > { %p2932_p10 = scmp.ne.s32.totalorder %s3351_s26, %s2931_s30  ;;  %s2936_s12 = sshll.u32 %s3041_s18, 4  ;;  %s2937_s12 = int_to_ptr.vmem [resolvable:$false] %s2936_s12 }
  0xcf   : > { %s2938_s9 = scalar_lea.vmem %s2937_s12, 4096  ;;  %p2939_p6 = scmp.lt.s32.totalorder %s3351_s26, %s2937_s12 }
  0xd0   : > { %p2934_p1 = pnand %p2932_p10, %p2918_p8  ;;  %p2940_p11 = scmp.lt.s32.totalorder %s2938_s9, %s2931_s30 }
  0xd2   : > { %p2935_p9 = pneg %p2934_p1  ;;  %p2941_p12 = por %p2940_p11, %p2939_p6 }
  0xd4   : > { %p2942_p13 = pnand %p2941_p12, %p2935_p9 }
  0xd6   : > { %2945 = shalt.err (!%p2942_p13)
}
  0xd7   : > { %s3042_s10 = smov 512   ;;  %s3043_s19 = smov 32  }
  0xd8   : > { %2475 = dma.hbm_to_vmem [thread:$0]  (!%p3347_p4), %s3345_s16, 2048, %s3351_s26, %s3353_s25, %s3042_s10, %s3042_s10, %s3043_s19  }
  0xd9   : > { %p3553_p8 = scmp.ne.s32.totalorder %s3543_s28, 0 }
  0xda   : > { %s3384_s29 = sand.u32 (!%p3553_p8), 1, %s3020_s22  }
  0xdb   : > { %452 = sbr.rel (%p3553_p8) target bundleno = 1742 (0x6ce), region = 68  ;;  %s2139_s14 = sshll.u32 (!%p3553_p8), %s3384_s29, 7 }
  0xdc   : > { %s455_s30 = scalar_lea.sflag (!%p3553_p8), [#allocation3], %s3384_s29  ;;  %s3388_s18 = scalar_lea.vmem (!%p3553_p8), [#allocation2], %s2139_s14 }
  0xe2   : > { %2991 = dma.done.wait (%p3327_p2), %s455_s30, 2048  }
  0xe3   : > { %2993 = vsyncadd (%p3327_p2), %s455_s30, 4294965248  ;;  %p3554_p6 = scmp.eq.s32.totalorder %s3136_s27, 0 }
  0xe5   : > { %2995 = dma.done.wait (%p3554_p6), [#allocation6], 8208   ;;  %p3555_p9 = pmov %p3554_p6 }
  0xe6   : > { %p3556_p4 = pmov %p3554_p6 }
  0xe7   : > { %2997 = vsyncadd (%p3555_p9), [#allocation6], 4294959088 }
  0xe8   : > { %2999 = dma.done.wait (%p3556_p4), [#allocation9], 4160   ;;  %p3557_p3 = pmov %p3556_p4 }
  0xea   : > { %3001 = vsyncadd (%p3557_p3), [#allocation9], 4294963136  ;;  %p3558_p0 = pmov %p3557_p3 }
  0xec   : > { %3003 = dma.done.wait (%p3558_p0), [#allocation12], 528   ;;  %p3559_p5 = pmov %p3558_p0 }
  0xed   : > { %p3560_p2 = pmov %p3558_p0 }
  0xee   : > { %3005 = vsyncadd (%p3559_p5), [#allocation12], 4294966768 }
  0xef   : > { %3007 = dma.done.wait (%p3560_p2), [#allocation15], 16   ;;  %p3561_p7 = pmov %p3558_p0 }
  0xf0   : > { %v2546_v0 = vld [vmem:[#allocation5 + $0x40] sm:$0xff]   ;;  %v2550_v4 = vld [vmem:[#allocation5 + $0x48] sm:$0xff]   ;;  %v2554_v8 = vld [vmem:[#allocation5 + $0x50] sm:$0xff]   ;;  %vm3046_vm0 = vmmov 0   ;;  %s3047_s16 = smov 64   ;;  %vm1779_vm1 = vcmask 523264  }
  0xf1   : > { %3009 = vsyncadd (%p3561_p7), [#allocation15], 4294967280  ;;  %v2547_v1 = vld [vmem:[#allocation5 + $0xc0] sm:$0xff]   ;;  %2289 = vmatprep.subr.bf16.mxu0 %v2546_v0  ;;  %v2551_v5 = vld [vmem:[#allocation5 + $0xc8] sm:$0xff]   ;;  %s3562_s25 = sld [smem:[#allocation24_spill]]  ;;  %vm1895_vm2 = vcmask 261120  }
  0xf2   : > { %v2548_v2 = vld [vmem:[#allocation5] sm:$0xff]   ;;  %2317 = vmatprep.subr.bf16.mxu1 %v2547_v1  ;;  %v2552_v6 = vld [vmem:[#allocation5 + $0x8] sm:$0xff]   ;;  %v2555_v9 = vld [vmem:[#allocation5 + $0xd0] sm:$0xff]   ;;  %s3564_s12 = sld [smem:[#allocation26_spill]]  ;;  %s2284_s9 = sshll.u32 %s3136_s27, 4 }
  0xf3   : > { %v2549_v3 = vld [vmem:[#allocation5 + $0x80] sm:$0xff]   ;;  %2290 = vmatpush3.bf16.msra.mxu0 %v2548_v2  ;;  %v2553_v7 = vld [vmem:[#allocation5 + $0x88] sm:$0xff]   ;;  %v2556_v10 = vld [vmem:[#allocation5 + $0x10] sm:$0xff]   ;;  %s525_s10 = scalar_lea.vmem [#allocation16], %s3384_s29  ;;  %s1979_s15 = scalar_lea.sflag [#allocation4], %s3384_s29 }
  0xf4   : > { %2318 = vmatpush3.bf16.msra.mxu1 %v2549_v3  ;;  %2291 = vmatprep.subr.bf16.mxu0 %v2550_v4  ;;  %v2557_v11 = vld [vmem:[#allocation5 + $0x90] sm:$0xff]   ;;  %v2558_v12 = vld [vmem:[#allocation5 + $0x58] sm:$0xff]   ;;  %v2562_v16 = vld [vmem:[#allocation5 + $0x60] sm:$0xff]   ;;  %s1991_s19 = sshll.u32 %s525_s10, 4  ;;  %p3566_p1 = scmp.ne.s32.totalorder %s3550_s11, 0  ;;  %s3477_s19 = int_to_ptr.vmem [resolvable:$true] %s1991_s19 }
  0xf5   : > { %2319 = vmatprep.subr.bf16.mxu1 %v2551_v5  ;;  %v2559_v13 = vld [vmem:[#allocation5 + $0xd8] sm:$0xff]   ;;  %v2563_v17 = vld [vmem:[#allocation5 + $0xe0] sm:$0xff]   ;;  %v2566_v20 = vld [vmem:[#allocation5 + $0x68] sm:$0xff]   ;;  %s3049_s27 = smov [#allocation16]  }
  0xf6   : > { %v2560_v14 = vld [vmem:[#allocation5 + $0x18] sm:$0xff]   ;;  %v2564_v18 = vld [vmem:[#allocation5 + $0x20] sm:$0xff]   ;;  %v2567_v21 = vld [vmem:[#allocation5 + $0xe8] sm:$0xff]   ;;  %s2950_s26 = sshll.u32 %s3049_s27, 4  ;;  %s2951_s26 = int_to_ptr.vmem [resolvable:$false] %s2950_s26 }
  0xf7   : > { %2292 = vmatpush3.bf16.msra.mxu0 %v2552_v6  ;;  %v2561_v15 = vld [vmem:[#allocation5 + $0x98] sm:$0xff]   ;;  %v2565_v19 = vld [vmem:[#allocation5 + $0xa0] sm:$0xff]   ;;  %v2568_v22 = vld [vmem:[#allocation5 + $0x28] sm:$0xff]   ;;  %s2952_s20 = scalar_lea.vmem %s2951_s26, 32  ;;  %p2953_p13 = scmp.lt.s32.totalorder %s3477_s19, %s2951_s26 }
  0xf8   : > { %2320 = vmatpush3.bf16.msra.mxu1 %v2553_v7  ;;  %2293 = vmatprep.subr.bf16.mxu0 %v2554_v8  ;;  %v2569_v23 = vld [vmem:[#allocation5 + $0xa8] sm:$0xff]   ;;  %v2570_v24 = vld [vmem:[#allocation5 + $0x70] sm:$0xff]   ;;  %v2574_v28 = vld [vmem:[#allocation5 + $0x78] sm:$0xff]  }
  0xf9   : > { %2321 = vmatprep.subr.bf16.mxu1 %v2555_v9  ;;  %v2571_v25 = vld [vmem:[#allocation5 + $0xf0] sm:$0xff]   ;;  %v2575_v29 = vld [vmem:[#allocation5 + $0xf8] sm:$0xff]   ;;  %v528_v32 = vld [vmem:[%s3388_s18] sm:$0xff] }
  0xfa   : > { %v2572_v26 = vld [vmem:[#allocation5 + $0x30] sm:$0xff]   ;;  %v2576_v30 = vld [vmem:[#allocation5 + $0x38] sm:$0xff]   ;;  %v532_v33 = vld [vmem:[%s3388_s18 + $0x20] sm:$0xff] }
  0xfb   : > { %2294 = vmatpush3.bf16.msra.mxu0 %v2556_v10  ;;  %v2573_v27 = vld [vmem:[#allocation5 + $0xb0] sm:$0xff]   ;;  %v2577_v31 = vld [vmem:[#allocation5 + $0xb8] sm:$0xff]   ;;  %v529_v34 = vld [vmem:[%s3388_s18 + $0x8] sm:$0xff]  ;;  %v2148_v35 = vcombine.low %v528_v32, %v532_v33  ;;  %v2149_v36 = vcombine.high %v528_v32, %v532_v33 }
  0xfc   : > { %2322 = vmatpush3.bf16.msra.mxu1 %v2557_v11  ;;  %2295 = vmatprep.subr.bf16.mxu0 %v2558_v12  ;;  %v533_v37 = vld [vmem:[%s3388_s18 + $0x28] sm:$0xff]  ;;  %v2578_v40 = vld [vmem:[#allocation5 + $0x140] sm:$0xff]   ;;  %v2586_v48 = vld [vmem:[#allocation5 + $0x150] sm:$0xff]  }
  0xfd   : > { %2323 = vmatprep.subr.bf16.mxu1 %v2559_v13  ;;  %v2150_v38 = vcombine.low %v529_v34, %v533_v37  ;;  %v2151_v39 = vcombine.high %v529_v34, %v533_v37  ;;  %1175 = vmatprep.mubr.bf16.mxu0 %v2149_v36  ;;  %v2579_v41 = vld [vmem:[#allocation5 + $0x1c0] sm:$0xff]   ;;  %v2582_v44 = vld [vmem:[#allocation5 + $0x148] sm:$0xff]   ;;  %v2587_v49 = vld [vmem:[#allocation5 + $0x1d0] sm:$0xff]  }
  0xfe   : > { %v2580_v42 = vld [vmem:[#allocation5 + $0x100] sm:$0xff]   ;;  %v2583_v45 = vld [vmem:[#allocation5 + $0x1c8] sm:$0xff]   ;;  %v2588_v50 = vld [vmem:[#allocation5 + $0x110] sm:$0xff]  }
  0xff   : > { %2296 = vmatpush3.bf16.msra.mxu0 %v2560_v14  ;;  %1224 = vmatprep.mubr.bf16.mxu1 %v2151_v39  ;;  %v2581_v43 = vld [vmem:[#allocation5 + $0x180] sm:$0xff]   ;;  %v2584_v46 = vld [vmem:[#allocation5 + $0x108] sm:$0xff]   ;;  %v2589_v51 = vld [vmem:[#allocation5 + $0x190] sm:$0xff]  }
 0x100   : > { %2324 = vmatpush3.bf16.msra.mxu1 %v2561_v15  ;;  %2297 = vmatprep.subr.bf16.mxu0 %v2562_v16  ;;  %v2585_v47 = vld [vmem:[#allocation5 + $0x188] sm:$0xff]   ;;  %v2590_v52 = vld [vmem:[#allocation5 + $0x158] sm:$0xff]   ;;  %v2594_v56 = vld [vmem:[#allocation5 + $0x160] sm:$0xff]  }
 0x101   : > { %2325 = vmatprep.subr.bf16.mxu1 %v2563_v17  ;;  %v2591_v53 = vld [vmem:[#allocation5 + $0x1d8] sm:$0xff]   ;;  %v2595_v57 = vld [vmem:[#allocation5 + $0x1e0] sm:$0xff]   ;;  %v2598_v63 = vld [vmem:[#allocation5 + $0x168] sm:$0xff]  }
 0x102   : > { %v2592_v54 = vld [vmem:[#allocation5 + $0x118] sm:$0xff]   ;;  %v2596_v58 = vld [vmem:[#allocation5 + $0x120] sm:$0xff]   ;;  %v2599_v1 = vld [vmem:[#allocation5 + $0x1e8] sm:$0xff]  }
 0x103   : > { %2298 = vmatpush3.bf16.msra.mxu0 %v2564_v18  ;;  %v2593_v55 = vld [vmem:[#allocation5 + $0x198] sm:$0xff]   ;;  %v2597_v59 = vld [vmem:[#allocation5 + $0x1a0] sm:$0xff]   ;;  %v2600_v2 = vld [vmem:[#allocation5 + $0x128] sm:$0xff]  }
 0x104   : > { %2326 = vmatpush3.bf16.msra.mxu1 %v2565_v19  ;;  %2299 = vmatprep.subr.bf16.mxu0 %v2566_v20  ;;  %v536_v60 = vld [vmem:[%s3388_s18 + $0x40] sm:$0xff]  ;;  %v2601_v3 = vld [vmem:[#allocation5 + $0x1a8] sm:$0xff]   ;;  %v2602_v8 = vld [vmem:[#allocation5 + $0x170] sm:$0xff]  }
 0x105   : > { %2327 = vmatprep.subr.bf16.mxu1 %v2567_v21  ;;  %v540_v61 = vld [vmem:[%s3388_s18 + $0x60] sm:$0xff]  ;;  %v537_v4 = vld [vmem:[%s3388_s18 + $0x48] sm:$0xff]  ;;  %v2603_v9 = vld [vmem:[#allocation5 + $0x1f0] sm:$0xff]  }
 0x106   : > { %v2157_v62 = vcombine.high %v536_v60, %v540_v61  ;;  %v2156_v0 = vcombine.low %v536_v60, %v540_v61  ;;  %v541_v5 = vld [vmem:[%s3388_s18 + $0x68] sm:$0xff]  ;;  %v2604_v10 = vld [vmem:[#allocation5 + $0x130] sm:$0xff]   ;;  %v2606_v12 = vld [vmem:[#allocation5 + $0x178] sm:$0xff]  }
 0x107   : > { %2300 = vmatpush3.bf16.msra.mxu0 %v2568_v22  ;;  %v2159_v6 = vcombine.high %v537_v4, %v541_v5  ;;  %v2158_v7 = vcombine.low %v537_v4, %v541_v5  ;;  %v2605_v11 = vld [vmem:[#allocation5 + $0x1b0] sm:$0xff]   ;;  %v2607_v13 = vld [vmem:[#allocation5 + $0x1f8] sm:$0xff]  }
 0x108   : > { %2328 = vmatpush3.bf16.msra.mxu1 %v2569_v23  ;;  %2301 = vmatprep.subr.bf16.mxu0 %v2570_v24  ;;  %v2608_v14 = vld [vmem:[#allocation5 + $0x138] sm:$0xff]   ;;  %v530_v16 = vld [vmem:[%s3388_s18 + $0x10] sm:$0xff] }
 0x109   : > { %2329 = vmatprep.subr.bf16.mxu1 %v2571_v25  ;;  %v2609_v15 = vld [vmem:[#allocation5 + $0x1b8] sm:$0xff]   ;;  %v534_v17 = vld [vmem:[%s3388_s18 + $0x30] sm:$0xff] }
 0x10a   : > { %v531_v18 = vld [vmem:[%s3388_s18 + $0x18] sm:$0xff]  ;;  %v2152_v20 = vcombine.low %v530_v16, %v534_v17  ;;  %v2153_v21 = vcombine.high %v530_v16, %v534_v17  ;;  %v538_v24 = vld [vmem:[%s3388_s18 + $0x50] sm:$0xff] }
 0x10b   : > { %2302 = vmatpush3.bf16.msra.mxu0 %v2572_v26  ;;  %v535_v19 = vld [vmem:[%s3388_s18 + $0x38] sm:$0xff]  ;;  %v542_v25 = vld [vmem:[%s3388_s18 + $0x70] sm:$0xff] }
 0x10c   : > { %2330 = vmatpush3.bf16.msra.mxu1 %v2573_v27  ;;  %2303 = vmatprep.subr.bf16.mxu0 %v2574_v28  ;;  %v2154_v22 = vcombine.low %v531_v18, %v535_v19  ;;  %v2155_v23 = vcombine.high %v531_v18, %v535_v19  ;;  %v539_v26 = vld [vmem:[%s3388_s18 + $0x58] sm:$0xff]  ;;  %v2161_v27 = vcombine.high %v538_v24, %v542_v25  ;;  %v2610_v34 = vld [vmem:[#allocation8] ss:$16 sps:$4 sm:$0xff]  }
 0x10d   : > { %2331 = vmatprep.subr.bf16.mxu1 %v2575_v29  ;;  %v543_v28 = vld [vmem:[%s3388_s18 + $0x78] sm:$0xff]  ;;  %s3048_s18 = smov 96  }
 0x10e   : > { %v2163_v29 = vcombine.high %v539_v26, %v543_v28  ;;  %v2612_v32 = vld [vmem:[#allocation8 + $0x4] ss:$16 sps:$4 sm:$0xff]   ;;  %v2615_v33 = vld [vmem:[#allocation8 + $0xc] ss:$16 sps:$4 sm:$0xff]   ;;  %v2619_v39 = vld [vmem:[#allocation8 + $0x28] ss:$16 sps:$4 sm:$0xff]  }
 0x10f   : > { %2304 = vmatpush3.bf16.msra.mxu0 %v2576_v30  ;;  %v2160_v30 = vcombine.low %v538_v24, %v542_v25  ;;  %v2618_v36 = vld [vmem:[#allocation8 + $0x24] ss:$16 sps:$4 sm:$0xff]   ;;  %v2621_v37 = vld [vmem:[#allocation8 + $0x2c] ss:$16 sps:$4 sm:$0xff]  }
 0x110   : > { %2332 = vmatpush3.bf16.msra.mxu1 %v2577_v31  ;;  %2345 = vmatprep.subr.bf16.mxu0 %v2578_v40  ;;  %v2162_v31 = vcombine.low %v539_v26, %v543_v28  ;;  %v2624_v40 = vld [vmem:[#allocation8 + $0x44] ss:$16 sps:$4 sm:$0xff]   ;;  %v2657_v61 = vld [vmem:[#allocation8 + $0xec] ss:$16 sps:$4 sm:$0xff]  }
 0x111   : > { %2373 = vmatprep.subr.bf16.mxu1 %v2579_v41  ;;  %v2627_v41 = vld [vmem:[#allocation8 + $0x4c] ss:$16 sps:$4 sm:$0xff]   ;;  %v2654_v60 = vld [vmem:[#allocation8 + $0xe4] ss:$16 sps:$4 sm:$0xff]  }
 0x112   : > { %1176 = vmatmul.mubr.bf16.vlgmr.msra.gmra.mrb[0].mxu0 %v2148_v35  ;;  %v2613_v35 = vld [vmem:[#allocation8 + $0x8] ss:$16 sps:$4 sm:$0xff]  }
 0x113   : > { %1225 = vmatmul.mubr.bf16.vlgmr.msra.gmra.mrb[0].mxu1 %v2150_v38  ;;  %2346 = vmatpush3.bf16.msra.mxu0 %v2580_v42  ;;  %v2616_v38 = vld [vmem:[#allocation8 + $0x20] ss:$16 sps:$4 sm:$0xff]  }
 0x114   : > { %2374 = vmatpush3.bf16.msra.mxu1 %v2581_v43  ;;  %2347 = vmatprep.subr.bf16.mxu0 %v2582_v44  ;;  %v2622_v42 = vld [vmem:[#allocation8 + $0x40] ss:$16 sps:$4 sm:$0xff]   ;;  %v2625_v43 = vld [vmem:[#allocation8 + $0x48] ss:$16 sps:$4 sm:$0xff]   ;;  %v2630_v44 = vld [vmem:[#allocation8 + $0x64] ss:$16 sps:$4 sm:$0xff]  }
 0x115   : > { %2375 = vmatprep.subr.bf16.mxu1 %v2583_v45  ;;  %1183 = vmatprep.mubr.bf16.mxu0 %v2157_v62  ;;  %v2633_v45 = vld [vmem:[#allocation8 + $0x6c] ss:$16 sps:$4 sm:$0xff]   ;;  %v2652_v62 = vld [vmem:[#allocation8 + $0xe0] ss:$16 sps:$4 sm:$0xff]  }
 0x116   : > { %1232 = vmatprep.mubr.bf16.mxu1 %v2159_v6 }
 0x117   : > { %2348 = vmatpush3.bf16.msra.mxu0 %v2584_v46  ;;  %v2628_v46 = vld [vmem:[#allocation8 + $0x60] ss:$16 sps:$4 sm:$0xff]  }
 0x118   : > { %2376 = vmatpush3.bf16.msra.mxu1 %v2585_v47  ;;  %2349 = vmatprep.subr.bf16.mxu0 %v2586_v48  ;;  %v2631_v47 = vld [vmem:[#allocation8 + $0x68] ss:$16 sps:$4 sm:$0xff]   ;;  %v2636_v48 = vld [vmem:[#allocation8 + $0x84] ss:$16 sps:$4 sm:$0xff]  }
 0x119   : > { %2377 = vmatprep.subr.bf16.mxu1 %v2587_v49  ;;  %v2639_v49 = vld [vmem:[#allocation8 + $0x8c] ss:$16 sps:$4 sm:$0xff]  }
 0x11a   : > { %1184 = vmatmul.mubr.bf16.gmra.mrb[4].mxu0 %v2156_v0  ;;  %v3044_v0 = vmov 0  }
 0x11b   : > { %2350 = vmatpush3.bf16.msra.mxu0 %v2588_v50  ;;  %1233 = vmatmul.mubr.bf16.gmra.mrb[4].mxu1 %v2158_v7  ;;  %v2634_v50 = vld [vmem:[#allocation8 + $0x80] ss:$16 sps:$4 sm:$0xff]  }
 0x11c   : > { %2378 = vmatpush3.bf16.msra.mxu1 %v2589_v51  ;;  %2351 = vmatprep.subr.bf16.mxu0 %v2590_v52  ;;  %v2637_v51 = vld [vmem:[#allocation8 + $0x88] ss:$16 sps:$4 sm:$0xff]   ;;  %v2642_v52 = vld [vmem:[#allocation8 + $0xa4] ss:$16 sps:$4 sm:$0xff]  }
 0x11d   : > { %2379 = vmatprep.subr.bf16.mxu1 %v2591_v53  ;;  %1273 = vmatprep.mubr.bf16.mxu0 %v2153_v21  ;;  %v2645_v53 = vld [vmem:[#allocation8 + $0xac] ss:$16 sps:$4 sm:$0xff]  }
 0x11e   : > { %1322 = vmatprep.mubr.bf16.mxu1 %v2155_v23 }
 0x11f   : > { %2352 = vmatpush3.bf16.msra.mxu0 %v2592_v54  ;;  %v2640_v54 = vld [vmem:[#allocation8 + $0xa0] ss:$16 sps:$4 sm:$0xff]  }
 0x120   : > { %2380 = vmatpush3.bf16.msra.mxu1 %v2593_v55  ;;  %2353 = vmatprep.subr.bf16.mxu0 %v2594_v56  ;;  %v2643_v55 = vld [vmem:[#allocation8 + $0xa8] ss:$16 sps:$4 sm:$0xff]   ;;  %v2648_v56 = vld [vmem:[#allocation8 + $0xc4] ss:$16 sps:$4 sm:$0xff]  }
 0x121   : > { %2381 = vmatprep.subr.bf16.mxu1 %v2595_v57  ;;  %v2651_v57 = vld [vmem:[#allocation8 + $0xcc] ss:$16 sps:$4 sm:$0xff]  }
 0x123   : > { %2354 = vmatpush3.bf16.msra.mxu0 %v2596_v58  ;;  %v2646_v58 = vld [vmem:[#allocation8 + $0xc0] ss:$16 sps:$4 sm:$0xff]  }
 0x124   : > { %2382 = vmatpush3.bf16.msra.mxu1 %v2597_v59  ;;  %2355 = vmatprep.subr.bf16.mxu0 %v2598_v63  ;;  %v2649_v59 = vld [vmem:[#allocation8 + $0xc8] ss:$16 sps:$4 sm:$0xff]  }
 0x125   : > { %2383 = vmatprep.subr.bf16.mxu1 %v2599_v1  ;;  %v2655_v63 = vld [vmem:[#allocation8 + $0xe8] ss:$16 sps:$4 sm:$0xff]  }
 0x127   : > { %2356 = vmatpush3.bf16.msra.mxu0 %v2600_v2 }
 0x128   : > { %2384 = vmatpush3.bf16.msra.mxu1 %v2601_v3  ;;  %2357 = vmatprep.subr.bf16.mxu0 %v2602_v8  ;;  %v2147_v3 = vld [vmem:[#allocation7] ss:$0 sm:$0xff] }
 0x129   : > { %2385 = vmatprep.subr.bf16.mxu1 %v2603_v9 }
 0x12b   : > { %2358 = vmatpush3.bf16.msra.mxu0 %v2604_v10 }
 0x12c   : > { %2386 = vmatpush3.bf16.msra.mxu1 %v2605_v11  ;;  %2359 = vmatprep.subr.bf16.mxu0 %v2606_v12 }
 0x12d   : > { %2387 = vmatprep.subr.bf16.mxu1 %v2607_v13 }
 0x12f   : > { %2360 = vmatpush3.bf16.msra.mxu0 %v2608_v14 }
 0x130   : > { %2388 = vmatpush3.bf16.msra.mxu1 %v2609_v15  ;;  %1586 = vmatprep.subr.bf16.mxu0 %v2612_v32 }
 0x131   : > { %1627 = vmatprep.subr.bf16.mxu1 %v2615_v33 }
 0x132   : > { %1274 = vmatmul.mubr.bf16.vlgmr.msra.gmra.mrb[8].mxu0 %v2152_v20 }
 0x133   : > { %1323 = vmatmul.mubr.bf16.vlgmr.msra.gmra.mrb[8].mxu1 %v2154_v22  ;;  %1281 = vmatprep.mubr.bf16.mxu0 %v2161_v27 }
 0x134   : > { %1330 = vmatprep.mubr.bf16.mxu1 %v2163_v29  ;;  %1587 = vmatpush1.bf16.msra.mxu0 %v2610_v34 }
 0x135   : > { %1628 = vmatpush1.bf16.msra.mxu1 %v2613_v35  ;;  %1588 = vmatprep.subr.bf16.mxu0 %v2618_v36 }
 0x136   : > { %1629 = vmatprep.subr.bf16.mxu1 %v2621_v37 }
 0x138   : > { %1589 = vmatpush1.bf16.msra.mxu0 %v2616_v38 }
 0x139   : > { %1630 = vmatpush1.bf16.msra.mxu1 %v2619_v39  ;;  %1590 = vmatprep.subr.bf16.mxu0 %v2624_v40 }
 0x13a   : > { %1282 = vmatmul.mubr.bf16.gmra.mrb[12].mxu0 %v2160_v30  ;;  %1631 = vmatprep.subr.bf16.mxu1 %v2627_v41 }
 0x13b   : > { %1331 = vmatmul.mubr.bf16.gmra.mrb[12].mxu1 %v2162_v31  ;;  %1618 = vmatprep.mubr.bf16.mxu0 %v3044_v0 }
 0x13c   : > { %1591 = vmatpush1.bf16.msra.mxu0 %v2622_v42  ;;  %1659 = vmatprep.mubr.bf16.mxu1 %v3044_v0 }
 0x13d   : > { %1632 = vmatpush1.bf16.msra.mxu1 %v2625_v43  ;;  %1592 = vmatprep.subr.bf16.mxu0 %v2630_v44 }
 0x13e   : > { %1633 = vmatprep.subr.bf16.mxu1 %v2633_v45 }
 0x140   : > { %1593 = vmatpush1.bf16.msra.mxu0 %v2628_v46 }
 0x141   : > { %1634 = vmatpush1.bf16.msra.mxu1 %v2631_v47  ;;  %1594 = vmatprep.subr.bf16.mxu0 %v2636_v48 }
 0x142   : > { %1635 = vmatprep.subr.bf16.mxu1 %v2639_v49 }
 0x144   : > { %1595 = vmatpush1.bf16.msra.mxu0 %v2634_v50 }
 0x145   : > { %1636 = vmatpush1.bf16.msra.mxu1 %v2637_v51  ;;  %1596 = vmatprep.subr.bf16.mxu0 %v2642_v52 }
 0x146   : > { %1637 = vmatprep.subr.bf16.mxu1 %v2645_v53 }
 0x148   : > { %1597 = vmatpush1.bf16.msra.mxu0 %v2640_v54 }
 0x149   : > { %1638 = vmatpush1.bf16.msra.mxu1 %v2643_v55  ;;  %1598 = vmatprep.subr.bf16.mxu0 %v2648_v56 }
 0x14a   : > { %1639 = vmatprep.subr.bf16.mxu1 %v2651_v57 }
 0x14c   : > { %1599 = vmatpush1.bf16.msra.mxu0 %v2646_v58 }
 0x14d   : > { %1640 = vmatpush1.bf16.msra.mxu1 %v2649_v59  ;;  %1600 = vmatprep.subr.bf16.mxu0 %v2654_v60 }
 0x14e   : > { %1641 = vmatprep.subr.bf16.mxu1 %v2657_v61 }
 0x150   : > { %1601 = vmatpush1.bf16.msra.mxu0 %v2652_v62 }
 0x151   : > { %1642 = vmatpush1.bf16.msra.mxu1 %v2655_v63 }
 0x1e5   : > { %v2305_v1 = vpop.f32.mrb[0].mxu0 }
 0x1e6   : > { %v2333_v2 = vpop.f32.mrb[0].mxu1  ;;  %v2306_v4 = vpop.f32.mrb[1].mxu0 }
 0x1e7   : > { %v2307_v5 = vadd.f32 %v2306_v4, %v2305_v1  ;;  %v2334_v6 = vpop.f32.mrb[1].mxu1  ;;  %v2308_v7 = vpop.f32.mrb[2].mxu0 }
 0x1e8   : > { %v2335_v8 = vadd.f32 %v2334_v6, %v2333_v2  ;;  %v2336_v9 = vpop.f32.mrb[2].mxu1  ;;  %v2309_v10 = vpop.f32.mrb[3].mxu0 }
 0x1e9   : > { %v1178_v11 = vadd.f32 %v2307_v5, %v2147_v3  ;;  %v2310_v12 = vadd.f32 %v2309_v10, %v2308_v7  ;;  %v2337_v13 = vpop.f32.mrb[3].mxu1 }
 0x1ea   : > { %v2338_v14 = vadd.f32 %v2337_v13, %v2336_v9 }
 0x1eb   : > { %v1227_v15 = vadd.f32 %v2335_v8, %v1178_v11  ;;  %v1181_v16 = vadd.f32 %v2310_v12, %v2147_v3 }
 0x1ed   : > { %v1230_v17 = vadd.f32 %v2338_v14, %v1181_v16  ;;  %v2311_v18 = vpop.f32.mrb[4].mxu0 }
 0x1ee   : > { %v2312_v19 = vpop.f32.mrb[5].mxu0  ;;  %v2339_v25 = vpop.f32.mrb[4].mxu1 }
 0x1ef   : > { %v2313_v20 = vadd.f32 %v2312_v19, %v2311_v18  ;;  %v2314_v21 = vpop.f32.mrb[6].mxu0  ;;  %v2340_v26 = vpop.f32.mrb[5].mxu1 }
 0x1f0   : > { %v2315_v22 = vpop.f32.mrb[7].mxu0  ;;  %v2341_v28 = vadd.f32 %v2340_v26, %v2339_v25  ;;  %v2342_v29 = vpop.f32.mrb[6].mxu1 }
 0x1f1   : > { %v2316_v23 = vadd.f32 %v2315_v22, %v2314_v21  ;;  %v1186_v24 = vadd.f32 %v2313_v20, %v2147_v3  ;;  %v2343_v30 = vpop.f32.mrb[7].mxu1 }
 0x1f2   : > { %v2344_v32 = vadd.f32 %v2343_v30, %v2342_v29  ;;  %v3045_v29 = vmov 0.0   ;;  %v2659_v30 = vld [vmem:[#allocation11 + $0x8] sm:$0xff]  }
 0x1f3   : > { %v1189_v27 = vadd.f32 %v2316_v23, %v2147_v3  ;;  %v1235_v31 = vadd.f32 %v2341_v28, %v1186_v24  ;;  %v2658_v28 = vld [vmem:[#allocation11] sm:$0xff]   ;;  %2406 = vmatprep.subr.bf16.mxu0 %v3045_v29 }
 0x1f5   : > { %v1238_v33 = vadd.f32 %v2344_v32, %v1189_v27 }
 0x205   : > { %v2361_v34 = vpop.f32.mrb[8].mxu0 }
 0x206   : > { %v2389_v35 = vpop.f32.mrb[8].mxu1  ;;  %v2362_v36 = vpop.f32.mrb[9].mxu0 }
 0x207   : > { %v2390_v37 = vpop.f32.mrb[9].mxu1  ;;  %v2363_v38 = vadd.f32 %v2362_v36, %v2361_v34  ;;  %v2364_v40 = vpop.f32.mrb[10].mxu0  ;;  %v1404_v34 = vld [vmem:[#allocation10] sm:$0xf] }
 0x208   : > { %v2391_v39 = vadd.f32 %v2390_v37, %v2389_v35  ;;  %v2392_v41 = vpop.f32.mrb[10].mxu1  ;;  %v2365_v42 = vpop.f32.mrb[11].mxu0 }
 0x209   : > { %v2393_v43 = vpop.f32.mrb[11].mxu1  ;;  %v1276_v44 = vadd.f32 %v2363_v38, %v1227_v15  ;;  %v2366_v45 = vadd.f32 %v2365_v42, %v2364_v40 }
 0x20a   : > { %v2394_v46 = vadd.f32 %v2393_v43, %v2392_v41 }
 0x20b   : > { %v1325_v47 = vadd.f32 %v2391_v39, %v1276_v44  ;;  %v1279_v48 = vadd.f32 %v2366_v45, %v1230_v17 }
 0x20d   : > { %v2228_v49 = vmul.f32 -1.442695, %v1325_v47  ;;  %v1328_v50 = vadd.f32 %v2394_v46, %v1279_v48  ;;  %v2367_v51 = vpop.f32.mrb[12].mxu0 }
 0x20e   : > { %v2395_v52 = vpop.f32.mrb[12].mxu1  ;;  %v2368_v53 = vpop.f32.mrb[13].mxu0 }
 0x20f   : > { %v2396_v54 = vpop.f32.mrb[13].mxu1  ;;  %2668 = vpow2.f32 %v2228_v49  ;;  %v2229_v55 = vmul.f32 -1.442695, %v1328_v50  ;;  %v2369_v56 = vadd.f32 %v2368_v53, %v2367_v51  ;;  %v2370_v58 = vpop.f32.mrb[14].mxu0 }
 0x210   : > { %v2397_v57 = vadd.f32 %v2396_v54, %v2395_v52  ;;  %v2398_v59 = vpop.f32.mrb[14].mxu1  ;;  %v2371_v60 = vpop.f32.mrb[15].mxu0 }
 0x211   : > { %v2399_v61 = vpop.f32.mrb[15].mxu1  ;;  %2670 = vpow2.f32 %v2229_v55  ;;  %v1284_v62 = vadd.f32 %v2369_v56, %v1235_v31  ;;  %v2372_v63 = vadd.f32 %v2371_v60, %v2370_v58  ;;  %v1406_v31 = vlaneseq }
 0x212   : > { %v2400_v1 = vadd.f32 %v2399_v61, %v2398_v59 }
 0x213   : > { %v1333_v2 = vadd.f32 %v2397_v57, %v1284_v62  ;;  %v1287_v3 = vadd.f32 %v2372_v63, %v1238_v33  ;;  %v1407_v32 = vshrl.u32 %v1406_v31, 7 }
 0x215   : > { %v2230_v4 = vmul.f32 -1.442695, %v1333_v2  ;;  %v1336_v5 = vadd.f32 %v2400_v1, %v1287_v3  ;;  %v3432_v33 = vsub.s32 0, %v1407_v32  ;;  %v3434_v35 = vsub.s32 1, %v1407_v32 }
 0x216   : > { %v1416_v49 = vsub.s32 2, %v1407_v32  ;;  %v1420_v52 = vsub.s32 3, %v1407_v32 }
 0x217   : > { %2672 = vpow2.f32 %v2230_v4  ;;  %v2231_v6 = vmul.f32 -1.442695, %v1336_v5  ;;  %v1413_v36 = vrot.slane %v1404_v34, %v3434_v35 }
 0x218   : > { %v1417_v54 = vrot.slane %v1404_v34, %v1416_v49  ;;  %v1421_v56 = vrot.slane %v1404_v34, %v1420_v52  ;;  %v2664_v52 = vld [vmem:[%s3562_s25 + $0x4] ss:$8 sps:$4 sm:$0xff]  }
 0x219   : > { %v2669_v7 = vpop.eup %2668  ;;  %2674 = vpow2.f32 %v2231_v6  ;;  %1899 = vmatprep.subr.bf16.mxu1 %v2664_v52 }
 0x21a   : > { %v1351_v8 = vadd.f32 1.0, %v2669_v7 }
 0x21b   : > { %v2671_v9 = vpop.eup %2670 }
 0x21c   : > { %2676 = vrcp.f32 %v1351_v8  ;;  %v1352_v10 = vadd.f32 1.0, %v2671_v9 }
 0x21e   : > { %2678 = vrcp.f32 %v1352_v10 }
 0x221   : > { %v2673_v11 = vpop.eup %2672 }
 0x222   : > { %v1353_v12 = vadd.f32 1.0, %v2673_v11 }
 0x223   : > { %v2675_v13 = vpop.eup %2674 }
 0x224   : > { %2680 = vrcp.f32 %v1353_v12  ;;  %v1354_v14 = vadd.f32 1.0, %v2675_v13 }
 0x226   : > { %v2677_v15 = vpop.eup %2676  ;;  %2682 = vrcp.f32 %v1354_v14 }
 0x227   : > { %v1363_v17 = vmul.f32 %v2677_v15, %v1325_v47 }
 0x228   : > { %v2679_v16 = vpop.eup %2678 }
 0x229   : > { %v1364_v18 = vmul.f32 %v2679_v16, %v1328_v50 }
 0x22b   : > { %v1367_v19 = vadd.f32 %v1364_v18, %v1363_v17 }
 0x22e   : > { %v2681_v20 = vpop.eup %2680 }
 0x22f   : > { %v1365_v21 = vmul.f32 %v2681_v20, %v1333_v2  ;;  %v2660_v20 = vld [vmem:[#allocation11 + $0x10] sm:$0xff]  }
 0x230   : > { %v2683_v22 = vpop.eup %2682 }
 0x231   : > { %v1368_v23 = vadd.f32 %v1367_v19, %v1365_v21  ;;  %v1366_v24 = vmul.f32 %v2683_v22, %v1336_v5  ;;  %v1714_v21 = vld [vmem:[%s3524_s5] sm:$0x3] }
 0x232   : > { %v2661_v22 = vld [vmem:[#allocation11 + $0x18] sm:$0xff]   ;;  %v1723_v32 = vrot.slane %v1714_v21, %v3434_v35 }
 0x233   : > { %v1369_v25 = vadd.f32 %v1368_v23, %v1366_v24 }
 0x235   : > { %v1370_v26 = vmul.f32 0.25, %v1369_v25 }
 0x237   : > { %v1371_v27 = vpack.c.bf16 %v1370_v26, %v1370_v26  ;;  %v1719_v26 = vrot.slane %v1714_v21, %v3432_v33 }
 0x239   : > { %1619 = vmatmul.mubr.bf16.vlgmr.msra.gmra.mrb[16].mxu0 %v1371_v27  ;;  %1660 = vmatmul.mubr.bf16.vlgmr.msra.gmra.mrb[16].mxu1 %v1371_v27 }
 0x23a   : > { %1931 = vmatprep.mubr.bf16.mxu1 %v3044_v0  ;;  %2407 = vmatpush3.bf16.msra.mxu0 %v2658_v28  ;;  %v1409_v0 = vrot.slane %v1404_v34, %v3432_v33 }
 0x23b   : > { %2408 = vmatprep.subr.bf16.mxu0 %v3045_v29  ;;  %2414 = vmatprep.mubr.msk.bf16.mxu0 %vm3046_vm0, %v3045_v29 }
 0x23e   : > { %2409 = vmatpush3.bf16.msra.mxu0 %v2659_v30 }
 0x23f   : > { %2410 = vmatprep.subr.bf16.mxu0 %v3045_v29 }
 0x242   : > { %2411 = vmatpush3.bf16.msra.mxu0 %v2660_v20 }
 0x243   : > { %2412 = vmatprep.subr.bf16.mxu0 %v3045_v29 }
 0x246   : > { %2413 = vmatpush3.bf16.msra.mxu0 %v2661_v22 }
 0x30c   : > { %v1620_v37 = vpop.f32.mrb[16].mxu0  ;;  %v1661_v38 = vpop.f32.mrb[16].mxu1 }
 0x30d   : > { %v1621_v39 = vadd.f32 %v1620_v37, %v1409_v0  ;;  %v1622_v40 = vpop.f32.mrb[17].mxu0  ;;  %v1663_v41 = vpop.f32.mrb[17].mxu1  ;;  %v1662_v57 = vadd.f32 %v1661_v38, %v1417_v54  ;;  %v2665_v54 = vld [vmem:[%s3562_s25 + $0x10] ss:$8 sps:$4 sm:$0xff]  }
 0x30e   : > { %v1623_v42 = vadd.f32 %v1622_v40, %v1413_v36  ;;  %v1624_v43 = vpop.f32.mrb[18].mxu0  ;;  %v1665_v44 = vpop.f32.mrb[18].mxu1  ;;  %v1664_v58 = vadd.f32 %v1663_v41, %v1421_v56 }
 0x30f   : > { %v2264_v45 = vmul.f32 -1.442695, %v1621_v39  ;;  %v1625_v46 = vpop.f32.mrb[19].mxu0  ;;  %v1666_v47 = vpop.f32.mrb[19].mxu1  ;;  %v2266_v59 = vmul.f32 -1.442695, %v1662_v57 }
 0x310   : > { %v2265_v48 = vmul.f32 -1.442695, %v1623_v42  ;;  %v2267_v61 = vmul.f32 -1.442695, %v1664_v58  ;;  %v2268_v42 = vld [vmem:[#allocation13] ss:$0 sm:$0xff] }
 0x311   : > { %2684 = vpow2.f32 %v2264_v45 }
 0x312   : > { %2686 = vpow2.f32 %v2265_v48 }
 0x31b   : > { %v2685_v50 = vpop.eup %2684 }
 0x31c   : > { %v1680_v51 = vadd.f32 1.0, %v2685_v50  ;;  %v2687_v53 = vpop.eup %2686 }
 0x31d   : > { %v1681_v55 = vadd.f32 1.0, %v2687_v53  ;;  %v2667_v53 = vld [vmem:[%s3562_s25 + $0x14] ss:$8 sps:$4 sm:$0xff]  }
 0x31e   : > { %2688 = vrcp.f32 %v1680_v51  ;;  %v2662_v51 = vld [vmem:[%s3562_s25] ss:$8 sps:$4 sm:$0xff]  }
 0x31f   : > { %2690 = vrcp.f32 %v1681_v55  ;;  %1900 = vmatpush1.bf16.msra.mxu1 %v2662_v51 }
 0x320   : > { %2692 = vpow2.f32 %v2266_v59  ;;  %1901 = vmatprep.subr.bf16.mxu1 %v2667_v53 }
 0x321   : > { %2694 = vpow2.f32 %v2267_v61 }
 0x323   : > { %1902 = vmatpush1.bf16.msra.mxu1 %v2665_v54 }
 0x328   : > { %v2689_v60 = vpop.eup %2688 }
 0x329   : > { %v1692_v62 = vmax.f32 %v2689_v60, 1e-07  ;;  %v2691_v63 = vpop.eup %2690 }
 0x32a   : > { %v1693_v2 = vmax.f32 %v2691_v63, 1e-07  ;;  %v2693_v9 = vpop.eup %2692 }
 0x32b   : > { %v1694_v1 = vmin.f32 %v1692_v62, 0.9999999  ;;  %v2695_v14 = vpop.eup %2694  ;;  %v1682_v15 = vadd.f32 1.0, %v2693_v9 }
 0x32c   : > { %v1695_v4 = vmin.f32 %v1693_v2, 0.9999999  ;;  %v1683_v19 = vadd.f32 1.0, %v2695_v14 }
 0x32d   : > { %v1696_v3 = vrot.slane %v1694_v1, 4 }
 0x32e   : > { %v1702_v6 = vrot.slane %v1695_v4, 4 }
 0x32f   : > { %v1697_v5 = vadd.f32 %v1696_v3, %v1694_v1 }
 0x330   : > { %v1703_v8 = vadd.f32 %v1702_v6, %v1695_v4 }
 0x331   : > { %v1698_v7 = vrot.slane %v1697_v5, 2 }
 0x332   : > { %v1704_v11 = vrot.slane %v1703_v8, 2 }
 0x333   : > { %v1699_v10 = vadd.f32 %v1698_v7, %v1697_v5 }
 0x334   : > { %v1705_v13 = vadd.f32 %v1704_v11, %v1703_v8 }
 0x335   : > { %v1700_v12 = vrot.slane %v1699_v10, 1 }
 0x336   : > { %v1706_v17 = vrot.slane %v1705_v13, 1 }
 0x337   : > { %v1701_v16 = vadd.f32 %v1700_v12, %v1699_v10 }
 0x338   : > { %v1707_v18 = vadd.f32 %v1706_v17, %v1705_v13 }
 0x339   : > { %2696 = vrcp.f32 %v1701_v16 }
 0x33a   : > { %2698 = vrcp.f32 %v1682_v15 }
 0x33b   : > { %2700 = vrcp.f32 %v1707_v18 }
 0x33c   : > { %2702 = vrcp.f32 %v1683_v19 }
 0x343   : > { %v2697_v23 = vpop.eup %2696 }
 0x344   : > { %v2699_v24 = vpop.eup %2698  ;;  %v1709_v25 = vmul.f32 %v2697_v23, %v1694_v1 }
 0x345   : > { %v2701_v27 = vpop.eup %2700 }
 0x346   : > { %v1712_v28 = vmul.f32 %v2699_v24, %v1709_v25  ;;  %v1711_v30 = vmul.f32 %v2701_v27, %v1695_v4  ;;  %v2703_v31 = vpop.eup %2702  ;;  %v2275_v4 = vld [vmem:[#allocation14] ss:$0 sm:$0xff] }
 0x348   : > { %v1726_v34 = vmul.f32 %v1719_v26, %v1712_v28  ;;  %v1713_v0 = vmul.f32 %v2703_v31, %v1711_v30 }
 0x34a   : > { %1729 = vrot.lane.b32.xlu0 %v1726_v34, %s3047_s16  ;;  %v1727_v36 = vmul.f32 %v1723_v32, %v1713_v0 }
 0x34e   : > { %1735 = vrot.lane.b32.xlu0 %v1727_v36, %s3047_s16 }
 0x3bc   : > { %v1730_v37 = vpop.permute.xlu0 %1729 }
 0x3bd   : > { %v1732_v38 = vadd.f32 %v1730_v37, %v1726_v34 }
 0x3bf   : > { %v1733_v39 = vadd.f32 %v1732_v38, %v1727_v36  ;;  %v2283_v38 = vld [vmem:[%s3564_s12] ss:$0 sm:$0xff] }
 0x3c0   : > { %v1736_v40 = vpop.permute.xlu0 %1735 }
 0x3c1   : > { %v1738_v41 = vadd.f32 %v1736_v40, %v1733_v39 }
 0x3c3   : > { %v1739_v29 = vpack.c.bf16 %v1738_v41, %v1738_v41 }
 0x3c5   : > { %2415 = vmatmul.mubr.msk.bf16.vlgmr.msra.gmra.mrb[20].mxu0 %vm1779_vm1, %v1739_v29 }
 0x498   : > { %v1817_v43 = vpop.f32.mrb[20].mxu0 }
 0x499   : > { %v1818_v44 = vadd.f32 %v2268_v42, %v1817_v43  ;;  %v2416_v45 = vpop.f32.mrb[21].mxu0 }
 0x49a   : > { %v1820_v46 = vpop.f32.mrb[22].mxu0 }
 0x49b   : > { %v2274_v47 = vmul.f32 -1.442695, %v1818_v44  ;;  %v2417_v48 = vpop.f32.mrb[23].mxu0 }
 0x49d   : > { %2704 = vpow2.f32 %v2274_v47 }
 0x4a7   : > { %v2705_v49 = vpop.eup %2704 }
 0x4a8   : > { %v1826_v50 = vadd.f32 1.0, %v2705_v49 }
 0x4aa   : > { %2706 = vrcp.f32 %v1826_v50 }
 0x4b4   : > { %v2707_v55 = vpop.eup %2706 }
 0x4b5   : > { %1841 = vrot.lane.b32.xlu1 %v2707_v55, %s3047_s16  ;;  %v1829_v56 = vmax.f32 %v2707_v55, 1e-07  ;;  %s3563_s16 = sld [smem:[#allocation25_spill]] }
 0x4b7   : > { %v1830_v57 = vmin.f32 %v1829_v56, 0.9999999 }
 0x4b9   : > { %v1831_v58 = vsel %vm1779_vm1, %v1830_v57, 0.0 }
 0x4ba   : > { %v1832_v59 = vrot.slane %v1831_v58, 4 }
 0x4bb   : > { %v1863_v11 = vld [vmem:[%s3563_s16] sm:$0x3]  ;;  %s2946_s16 = scalar_lea.vmem %s3477_s19, 16 }
 0x4bc   : > { %v1833_v60 = vadd.f32 %v1832_v59, %v1831_v58  ;;  %v1868_v12 = vrot.slane %v1863_v11, %v3432_v33  ;;  %v1872_v21 = vrot.slane %v1863_v11, %v3434_v35  ;;  %p2947_p10 = scmp.ne.s32.totalorder %s3477_s19, %s2946_s16  ;;  %p2954_p8 = scmp.lt.s32.totalorder %s2952_s20, %s2946_s16 }
 0x4be   : > { %v1834_v61 = vrot.slane %v1833_v60, 2  ;;  %p2948_p11 = pnand %p2947_p10, %p3566_p1  ;;  %p2955_p6 = por %p2954_p8, %p2953_p13 }
 0x4c0   : > { %v1835_v62 = vadd.f32 %v1834_v61, %v1833_v60  ;;  %p2949_p12 = pneg %p2948_p11 }
 0x4c2   : > { %v1836_v63 = vrot.slane %v1835_v62, 1  ;;  %p2956_p9 = pnand %p2955_p6, %p2949_p12 }
 0x4c4   : > { %v1837_v1 = vadd.f32 %v1836_v63, %v1835_v62 }
 0x4c6   : > { %2708 = vrcp.f32 %v1837_v1 }
 0x4d0   : > { %v2709_v2 = vpop.eup %2708 }
 0x4d1   : > { %v1839_v3 = vmul.f32 %v2709_v2, %v1830_v57 }
 0x527   : > { %v1842_v5 = vpop.permute.xlu1 %1841 }
 0x528   : > { %v1844_v6 = vmul.f32 %v1842_v5, %v1839_v3 }
 0x52a   : > { %v1852_v7 = vmul.f32 %v2275_v4, %v1844_v6 }
 0x52c   : > { %1854 = vrot.lane.b32.xlu1 %v1852_v7, %s3048_s18  ;;  %s3565_s18 = sld [smem:[#allocation27_spill]] }
 0x532   : > { %s3475_s28 = scalar_lea.hbm %s3565_s18, %s2284_s9 }
 0x59e   : > { %v1855_v8 = vpop.permute.xlu1 %1854 }
 0x59f   : > { %v1857_v9 = vadd.f32 %v1855_v8, %v1852_v7 }
 0x5a1   : > { %v1858_v10 = vpack.c.bf16 %v1857_v9, %v1857_v9 }
 0x5a3   : > { %2280 = vmatmul.mubr.msk.bf16.vlgmr.msra.gmra.mrb[20].mxu1 %vm1895_vm2, %v1858_v10 }
 0x676   : > { %v1933_v13 = vpop.f32.mrb[20].mxu1 }
 0x677   : > { %v1934_v14 = vadd.f32 %v1933_v13, %v1868_v12  ;;  %v1935_v15 = vpop.f32.mrb[21].mxu1 }
 0x678   : > { %v1937_v16 = vpop.f32.mrb[22].mxu1  ;;  %v1936_v22 = vadd.f32 %v1935_v15, %v1872_v21 }
 0x679   : > { %v2281_v17 = vmul.f32 -1.442695, %v1934_v14  ;;  %v1938_v18 = vpop.f32.mrb[23].mxu1 }
 0x67a   : > { %v2282_v23 = vmul.f32 -1.442695, %v1936_v22 }
 0x67b   : > { %2710 = vpow2.f32 %v2281_v17 }
 0x685   : > { %v2711_v19 = vpop.eup %2710 }
 0x686   : > { %v1946_v20 = vadd.f32 1.0, %v2711_v19 }
 0x688   : > { %2712 = vrcp.f32 %v1946_v20 }
 0x689   : > { %2714 = vpow2.f32 %v2282_v23 }
 0x692   : > { %v2713_v24 = vpop.eup %2712 }
 0x693   : > { %v1952_v25 = vmax.f32 %v2713_v24, 1e-07  ;;  %v2715_v31 = vpop.eup %2714 }
 0x694   : > { %v1947_v0 = vadd.f32 1.0, %v2715_v31 }
 0x695   : > { %v1953_v26 = vmin.f32 %v1952_v25, 0.9999999 }
 0x697   : > { %v1954_v27 = vrot.slane %v1953_v26, 4 }
 0x699   : > { %v1955_v33 = vadd.f32 %v1954_v27, %v1953_v26 }
 0x69b   : > { %v1956_v28 = vrot.slane %v1955_v33, 2 }
 0x69d   : > { %v1957_v30 = vadd.f32 %v1956_v28, %v1955_v33 }
 0x69f   : > { %v1958_v32 = vrot.slane %v1957_v30, 1 }
 0x6a1   : > { %v1959_v34 = vadd.f32 %v1958_v32, %v1957_v30 }
 0x6a3   : > { %2716 = vrcp.f32 %v1959_v34 }
 0x6a4   : > { %2718 = vrcp.f32 %v1947_v0 }
 0x6ad   : > { %v2717_v36 = vpop.eup %2716 }
 0x6ae   : > { %v1961_v35 = vmul.f32 %v2717_v36, %v1953_v26  ;;  %v2719_v37 = vpop.eup %2718 }
 0x6b0   : > { %v1962_v39 = vmul.f32 %v2719_v37, %v1961_v35 }
 0x6b2   : > { %v1970_v40 = vmul.f32 %v2283_v38, %v1962_v39 }
 0x6b4   : > { %v1971_v41 = vrot.slane %v1970_v40, 4 }
 0x6b6   : > { %v1972_v29 = vadd.f32 %v1971_v41, %v1970_v40 }
 0x6b8   : > { %v1973_v42 = vrot.slane %v1972_v29, 2 }
 0x6ba   : > { %v1974_v43 = vadd.f32 %v1973_v42, %v1972_v29 }
 0x6bc   : > { %v1975_v44 = vrot.slane %v1974_v43, 1 }
 0x6be   : > { %v1976_v45 = vadd.f32 %v1975_v44, %v1974_v43 }
 0x6c0   : > { %1977 = vst [vmem:[%s525_s10] sm:$0x1] %v1976_v45 }
 0x6c1   : > { %2959 = shalt.err (!%p2956_p9)
}
 0x6c2   : > { %s2960_s29 = scalar_lea.hbm %s3475_s28, 16  ;;  %s2964_s10 = scalar_lea.hbm %s3565_s18, 32 }
 0x6c3   : > { %p2961_p4 = scmp.ne.s32.totalorder %s3475_s28, %s2960_s29  ;;  %p2965_p5 = scmp.lt.u32.totalorder %s3475_s28, %s3565_s18 }
 0x6c4   : > { %p2966_p2 = scmp.lt.u32.totalorder %s2964_s10, %s2960_s29  ;;  %p2968_p10 = scmp.lt.u32.totalorder %s2960_s29, %s3475_s28 }
 0x6c5   : > { %p2962_p3 = pnand %p2961_p4, %p3566_p1 }
 0x6c6   : > { %p2967_p7 = por %p2966_p2, %p2965_p5 }
 0x6c7   : > { %p2963_p0 = pneg %p2962_p3 }
 0x6c8   : > { %p2969_p11 = por %p2968_p10, %p2967_p7 }
 0x6ca   : > { %p2970_p12 = pnand %p2969_p11, %p2963_p0 }
 0x6cc   : > { %2973 = shalt.err (!%p2970_p12)
}
 0x6cd   : > { %2448 = dma.vmem_to_hbm [thread:$0]  (%p3566_p1), %s3477_s19, 16, %s3475_s28, %s1979_s15  }
 0x6ce PF: > { %s2003_s16 = sand.u32 1, %s3016_s21   ;;  %p3567_p13 = scmp.ne.s32.totalorder %s3551_s1, 0 }
 0x6cf   : > { %p3568_p8 = scmp.ge.s32.totalorder %s3028_s24, 2  ;;  %s2004_s27 = scalar_lea.sflag [#allocation4], %s2003_s16 }
 0x6d1   : > { %p2477_p6 = pnand %p3568_p8, %p3567_p13 }
 0x6d3   : > { %3011 = dma.done.wait (!%p2477_p6), %s2004_s27, 16  }
 0x6d4   : > { %3013 = vsyncadd (!%p2477_p6), %s2004_s27, 4294967280  ;;  %p29_p9 = scmp.ge.s32.totalorder %s3311_s13, 4   ;;  %s3569_s21 = smov %s3020_s22 }
 0x6d5   : > { %s3570_s22 = smov %s3024_s23  ;;  %s3571_s23 = smov %s3323_s17 }
 0x6d6   : > { %s3572_s24 = smov %s3311_s13  ;;  %31 = sbr.rel (!%p29_p9) target bundleno = 15 (0xf), region = 141 }
 0x6dd   :  { %2008 = vsyncpa [#allocation3], 1 }
 0x6de   :  { %2010 = vsyncpa [#allocation3 + $0x1], 1 }
 0x6df   :  { %2011 = vsyncpa [#allocation6], 1 }
 0x6e0   :  { %2012 = vsyncpa [#allocation9], 1 }
 0x6e1   :  { %2013 = vsyncpa [#allocation12], 1 }
 0x6e2   :  { %2014 = vsyncpa [#allocation15], 1 }
 0x6e3   :  { %2015 = vsyncpa [#allocation4], 1 }
 0x6e4   :  { %2017 = vsyncpa [#allocation4 + $0x1], 1 }

</bundles_post_ra>
